<compile_context>
chip_gen: v7x
topology: tpu7x:2x2x1
jax: 0.10.0
libtpu: 0.0.40
codegen_flags: <defaults>
</compile_context>

<pallas_src>
import math

import jax
import jax.numpy as jnp
from jax.experimental import pallas as pl
from jax.experimental.pallas import tpu as pltpu

# ---------------- model config (small, synthetic) ----------------
B = 2            # batch
S = 8            # sequence length
H = 32           # hidden size
NUM_HEADS = 2
DH = H // NUM_HEADS
I = 64           # intermediate (FFN) size
VOCAB = 100
NUM_LAYERS = 2
NUM_LABELS = 4
LANE = 128       # TPU lane width; pooled/logits outputs are padded to this
LN_EPS = 1e-12
ATT_SCALE = 1.0 / math.sqrt(DH)

# packed per-layer weight slab: [H + I, 4H + I]
#   rows 0:H,   lanes 0:3H      -> Wqkv [H, 3H]
#   rows 0:H,   lanes 3H:4H     -> Wo   [H, H]
#   rows 0:H,   lanes 4H:4H+I   -> W1   [H, I]
#   rows H:H+I, lanes 0:H       -> W2   [I, H]
W_ROWS = H + I
W_COLS = 4 * H + I

# packed per-layer small-vector slab: [8, 128]
#   row 0: bqkv | row 1: bo | row 2: ln1_g | row 3: ln1_b
#   row 4: b1   | row 5: b2 | row 6: ln2_g | row 7: ln2_b
VEC_ROWS = 8

# misc slab (layer-independent): [40, 128]
#   rows 0:H       -> classifier weight Wc, zero-padded to 128 labels
#   rows H:H+B     -> pooling matrix P [B, B*S] (mean over tokens 1:)
#   row  H+B       -> embedding LN gamma
#   row  H+B+1     -> embedding LN beta
#   row  H+B+2     -> classifier bias, zero-padded to 128
MISC_ROWS = 40
ROW_P = H
ROW_EG = H + B
ROW_EB = H + B + 1
ROW_BC = H + B + 2


# ---------------- in-kernel helpers ----------------
def _layernorm(x, gamma, beta):
    mu = jnp.mean(x, axis=-1, keepdims=True)
    var = jnp.mean((x - mu) * (x - mu), axis=-1, keepdims=True)
    return (x - mu) * jax.lax.rsqrt(var + LN_EPS) * gamma + beta


# ---------------- fused Pallas kernel: emb-LN + 2 encoder layers + pool + classifier ----------------
def bert_forward_kernel(emb_ref, wslab_ref, vecs_ref, misc_ref, out_ref):
    # embedding LayerNorm fused in (embedding dropout is identity at inference)
    emb_g = misc_ref[ROW_EG:ROW_EG + 1, 0:H]
    emb_b = misc_ref[ROW_EB:ROW_EB + 1, 0:H]
    x = _layernorm(emb_ref[...], emb_g, emb_b)                                # [B*S, H]

    for l in range(NUM_LAYERS):                                               # static unroll
        # static ref slices out of the packed slabs (no extra DMAs)
        wqkv = wslab_ref[l, 0:H, 0:3 * H]                                     # [H, 3H]
        wo   = wslab_ref[l, 0:H, 3 * H:4 * H]                                 # [H, H]
        w1   = wslab_ref[l, 0:H, 4 * H:4 * H + I]                             # [H, I]
        w2   = wslab_ref[l, H:H + I, 0:H]                                     # [I, H]

        bqkv = vecs_ref[l, 0:1, 0:3 * H]
        bo   = vecs_ref[l, 1:2, 0:H]
        ln1g = vecs_ref[l, 2:3, 0:H]
        ln1b = vecs_ref[l, 3:4, 0:H]
        b1   = vecs_ref[l, 4:5, 0:I]
        b2   = vecs_ref[l, 5:6, 0:H]
        ln2g = vecs_ref[l, 6:7, 0:H]
        ln2b = vecs_ref[l, 7:8, 0:H]

        # fused QKV projection on the flattened activations (one MXU push)
        qkv = jnp.dot(x, wqkv, preferred_element_type=jnp.float32) + bqkv     # [B*S, 3H]

        # multi-head self-attention; per-head score/context einsums (3-D,
        # single batch dim) + head concat + ONE output projection of K=H.
        ctx_heads = []
        for h in range(NUM_HEADS):
            q_h = qkv[:, 0 * H + h * DH:0 * H + (h + 1) * DH].reshape(B, S, DH)
            k_h = qkv[:, 1 * H + h * DH:1 * H + (h + 1) * DH].reshape(B, S, DH)
            v_h = qkv[:, 2 * H + h * DH:2 * H + (h + 1) * DH].reshape(B, S, DH)

            scores = jnp.einsum('bqd,bkd->bqk', q_h, k_h,
                                preferred_element_type=jnp.float32) * ATT_SCALE
            scores = scores - jnp.max(scores, axis=-1, keepdims=True)
            e = jnp.exp(scores)
            p = e * pl.reciprocal(jnp.sum(e, axis=-1, keepdims=True), approx=True)

            ctx_h = jnp.einsum('bqk,bkd->bqd', p, v_h,
                               preferred_element_type=jnp.float32)            # [B, S, DH]
            ctx_heads.append(ctx_h.reshape(B * S, DH))

        ctx = jnp.concatenate(ctx_heads, axis=1)                              # [B*S, H]
        attn_out = jnp.dot(ctx, wo, preferred_element_type=jnp.float32) + bo

        x = _layernorm(x + attn_out, ln1g, ln1b)

        # FFN
        hidden = jnp.dot(x, w1, preferred_element_type=jnp.float32) + b1
        # TODO(synk): HF BERT default is exact erf GELU; tanh-approx kept (erf lowering not guaranteed on Mosaic).
        hidden = jax.nn.gelu(hidden)
        ffn = jnp.dot(hidden, w2, preferred_element_type=jnp.float32) + b2
        x = _layernorm(x + ffn, ln2g, ln2b)

    # CLSEmbedding = mean(hidden_states[-1][:, 1:], dim=1) as a single MXU
    # matmul with the constant pooling matrix P (1/(S-1) at tokens 1..S-1).
    P = misc_ref[ROW_P:ROW_P + B, 0:B * S]                                    # [B, B*S]
    pooled = jnp.dot(P, x, preferred_element_type=jnp.float32)                # [B, H]
    # dropout(p=0.1) is identity at inference time

    wc = misc_ref[0:H, :]                                                     # [H, 128] zero-padded
    bc = misc_ref[ROW_BC:ROW_BC + 1, :]                                       # [1, 128]
    logits = jnp.dot(pooled, wc, preferred_element_type=jnp.float32) + bc     # [B, 128]

    # single lane-dense packed store: [pooled | zero-pad | logits] -> [B, 256]
    out_ref[...] = jnp.concatenate(
        [pooled, jnp.zeros((B, LANE - H), jnp.float32), logits], axis=1)


_VMEM_SPEC = pl.BlockSpec(memory_space=pltpu.MemorySpace.VMEM)


def run_bert_fused(emb2d, wslab, vecs, misc):
    # Gridless single fused call — total resident working set is ~0.2 MiB.
    # Scale-up levers (NOT applied at toy size):
    #  * v7x: add a token grid axis with dimension_semantics=("parallel", ...)
    #    to use both TensorCores, and stream per-layer weight slabs via an
    #    "arbitrary" L grid axis + explicit vmem_limit_bytes (64 MiB VMEM).
    #  * v5e: if casting matmul operands to bf16, keep LN/softmax/GELU/residual
    #    math in f32 (no bf16 VPU/EUP on v5e).
    return pl.pallas_call(
        bert_forward_kernel,
        out_shape=jax.ShapeDtypeStruct((B, 2 * LANE), jnp.float32),
        in_specs=[_VMEM_SPEC] * 4,
        out_specs=_VMEM_SPEC,
    )(emb2d, wslab, vecs, misc)


# ---------------- parameter init (deterministic, synthetic) ----------------
def init_params(key):
    keys = jax.random.split(key, 4 + NUM_LAYERS * 4)
    ki = iter(keys)
    std = 0.02

    p = {
        'word_emb': jax.random.normal(next(ki), (VOCAB, H), jnp.float32) * std,
        'pos_emb':  jax.random.normal(next(ki), (S, H), jnp.float32) * std,
        'type_emb': jax.random.normal(next(ki), (2, H), jnp.float32) * std,
    }
    emb_ln_g = jnp.ones((H,), jnp.float32)
    emb_ln_b = jnp.zeros((H,), jnp.float32)

    wc = jax.random.normal(next(ki), (H, NUM_LABELS), jnp.float32) * std
    bc = jnp.zeros((NUM_LABELS,), jnp.float32)

    # packed per-layer weight + vector slabs (15 inputs -> 4 DMAs)
    wslab = jnp.zeros((NUM_LAYERS, W_ROWS, W_COLS), jnp.float32)
    vecs = jnp.zeros((NUM_LAYERS, VEC_ROWS, LANE), jnp.float32)
    for l in range(NUM_LAYERS):
        wqkv = jax.random.normal(next(ki), (H, 3 * H), jnp.float32) * std
        wo   = jax.random.normal(next(ki), (H, H), jnp.float32) * std
        w1   = jax.random.normal(next(ki), (H, I), jnp.float32) * std
        w2   = jax.random.normal(next(ki), (I, H), jnp.float32) * std
        wslab = wslab.at[l, 0:H, 0:3 * H].set(wqkv)
        wslab = wslab.at[l, 0:H, 3 * H:4 * H].set(wo)
        wslab = wslab.at[l, 0:H, 4 * H:4 * H + I].set(w1)
        wslab = wslab.at[l, H:H + I, 0:H].set(w2)
        # biases start at zero; LayerNorm gammas at one (synthetic init)
        vecs = vecs.at[l, 2, 0:H].set(1.0)   # ln1_g
        vecs = vecs.at[l, 6, 0:H].set(1.0)   # ln2_g

    # misc slab: classifier W/b, pooling matrix, embedding LN params
    tok = jnp.arange(B * S)
    P = jnp.where((tok[None, :] // S == jnp.arange(B)[:, None])
                  & (tok[None, :] % S != 0),
                  1.0 / (S - 1), 0.0).astype(jnp.float32)                     # [B, B*S]
    misc = jnp.zeros((MISC_ROWS, LANE), jnp.float32)
    misc = misc.at[0:H, 0:NUM_LABELS].set(wc)
    misc = misc.at[ROW_P:ROW_P + B, 0:B * S].set(P)
    misc = misc.at[ROW_EG, 0:H].set(emb_ln_g)
    misc = misc.at[ROW_EB, 0:H].set(emb_ln_b)
    misc = misc.at[ROW_BC, 0:NUM_LABELS].set(bc)

    p['wslab'] = wslab
    p['vecs'] = vecs
    p['misc'] = misc
    return p


# ---------------- full forward (gather glue outside, one fused Pallas call) ----------------
@jax.jit
def bert_for_model_forward(input_ids, params):
    # data-dependent embedding gather stays as JAX glue; the embedding LN and
    # everything downstream run inside the fused kernel.
    emb = (params['word_emb'][input_ids]
           + params['pos_emb'][None, :, :]
           + params['type_emb'][0][None, None, :])
    out = run_bert_fused(emb.reshape(B * S, H),
                         params['wslab'], params['vecs'], params['misc'])
    cls_embedding = out[:, :H]                      # CLSEmbedding (dropout == identity at inference)
    logits = out[:, LANE:LANE + NUM_LABELS]
    return cls_embedding, logits


if __name__ == "__main__":
    key = jax.random.PRNGKey(0)
    pkey, dkey = jax.random.split(key)
    params = init_params(pkey)
    input_ids = jax.random.randint(dkey, (B, S), 0, VOCAB, dtype=jnp.int32)

    cls_emb, logits = bert_for_model_forward(input_ids, params)
    jax.block_until_ready((cls_emb, logits))

    assert cls_emb.shape == (B, H) and logits.shape == (B, NUM_LABELS)
    assert jnp.all(jnp.isfinite(cls_emb)) and jnp.all(jnp.isfinite(logits))
    print("KERNEL_OK")
</pallas_src>

<mosaic_0001>
module attributes {stable_mosaic.version = 11 : i64} {
  func.func @bert_forward_kernel(%arg0: memref<16x32xf32, #tpu.memory_space<vmem>>, %arg1: memref<2x96x192xf32, #tpu.memory_space<vmem>>, %arg2: memref<2x8x128xf32, #tpu.memory_space<vmem>>, %arg3: memref<40x128xf32, #tpu.memory_space<vmem>>, %arg4: memref<2x256xf32, #tpu.memory_space<vmem>>) attributes {dimension_semantics = [], scalar_prefetch = 0 : i64, scratch_operands = 0 : i64, tpu.core_type = #tpu.core_type<tc>} {
    %c34 = arith.constant 34 : index
    %c0 = arith.constant 0 : index
    %0 = vector.load %arg3[%c34, %c0] : memref<40x128xf32, #tpu.memory_space<vmem>>, vector<1x32xf32>
    %c35 = arith.constant 35 : index
    %c0_0 = arith.constant 0 : index
    %1 = vector.load %arg3[%c35, %c0_0] : memref<40x128xf32, #tpu.memory_space<vmem>>, vector<1x32xf32>
    %c0_1 = arith.constant 0 : index
    %c0_2 = arith.constant 0 : index
    %2 = vector.load %arg0[%c0_1, %c0_2] : memref<16x32xf32, #tpu.memory_space<vmem>>, vector<16x32xf32>
    %cst = arith.constant dense<0.000000e+00> : vector<16xf32>
    %3 = vector.multi_reduction <add>, %2, %cst [1] : vector<16x32xf32> to vector<16xf32>
    %4 = vector.shape_cast %3 : vector<16xf32> to vector<16x1xf32>
    %cst_3 = arith.constant 3.200000e+01 : f32
    %5 = vector.broadcast %cst_3 : f32 to vector<16x1xf32>
    %6 = arith.divf %4, %5 : vector<16x1xf32>
    %7 = vector.broadcast %6 : vector<16x1xf32> to vector<16x32xf32>
    %8 = arith.subf %2, %7 : vector<16x32xf32>
    %9 = vector.broadcast %6 : vector<16x1xf32> to vector<16x32xf32>
    %10 = arith.subf %2, %9 : vector<16x32xf32>
    %11 = arith.mulf %8, %10 : vector<16x32xf32>
    %cst_4 = arith.constant dense<0.000000e+00> : vector<16xf32>
    %12 = vector.multi_reduction <add>, %11, %cst_4 [1] : vector<16x32xf32> to vector<16xf32>
    %13 = vector.shape_cast %12 : vector<16xf32> to vector<16x1xf32>
    %cst_5 = arith.constant 3.200000e+01 : f32
    %14 = vector.broadcast %cst_5 : f32 to vector<16x1xf32>
    %15 = arith.divf %13, %14 : vector<16x1xf32>
    %16 = vector.broadcast %6 : vector<16x1xf32> to vector<16x32xf32>
    %17 = arith.subf %2, %16 : vector<16x32xf32>
    %cst_6 = arith.constant 9.99999996E-13 : f32
    %18 = vector.broadcast %cst_6 : f32 to vector<16x1xf32>
    %19 = arith.addf %15, %18 : vector<16x1xf32>
    %20 = math.rsqrt %19 : vector<16x1xf32>
    %21 = vector.broadcast %20 : vector<16x1xf32> to vector<16x32xf32>
    %22 = arith.mulf %17, %21 : vector<16x32xf32>
    %23 = vector.broadcast %0 : vector<1x32xf32> to vector<16x32xf32>
    %24 = arith.mulf %22, %23 : vector<16x32xf32>
    %25 = vector.broadcast %1 : vector<1x32xf32> to vector<16x32xf32>
    %26 = arith.addf %24, %25 : vector<16x32xf32>
    %c0_7 = arith.constant 0 : index
    %c0_8 = arith.constant 0 : index
    %c0_9 = arith.constant 0 : index
    %27 = vector.load %arg1[%c0_7, %c0_8, %c0_9] : memref<2x96x192xf32, #tpu.memory_space<vmem>>, vector<1x32x96xf32>
    %28 = vector.shape_cast %27 : vector<1x32x96xf32> to vector<32x96xf32>
    %c0_10 = arith.constant 0 : index
    %c0_11 = arith.constant 0 : index
    %c96 = arith.constant 96 : index
    %29 = vector.load %arg1[%c0_10, %c0_11, %c96] : memref<2x96x192xf32, #tpu.memory_space<vmem>>, vector<1x32x32xf32>
    %30 = vector.shape_cast %29 : vector<1x32x32xf32> to vector<32x32xf32>
    %c0_12 = arith.constant 0 : index
    %c0_13 = arith.constant 0 : index
    %c128 = arith.constant 128 : index
    %31 = vector.load %arg1[%c0_12, %c0_13, %c128] : memref<2x96x192xf32, #tpu.memory_space<vmem>>, vector<1x32x64xf32>
    %32 = vector.shape_cast %31 : vector<1x32x64xf32> to vector<32x64xf32>
    %c0_14 = arith.constant 0 : index
    %c32 = arith.constant 32 : index
    %c0_15 = arith.constant 0 : index
    %33 = vector.load %arg1[%c0_14, %c32, %c0_15] : memref<2x96x192xf32, #tpu.memory_space<vmem>>, vector<1x64x32xf32>
    %34 = vector.shape_cast %33 : vector<1x64x32xf32> to vector<64x32xf32>
    %c0_16 = arith.constant 0 : index
    %c0_17 = arith.constant 0 : index
    %c0_18 = arith.constant 0 : index
    %35 = vector.load %arg2[%c0_16, %c0_17, %c0_18] : memref<2x8x128xf32, #tpu.memory_space<vmem>>, vector<1x1x96xf32>
    %36 = vector.shape_cast %35 : vector<1x1x96xf32> to vector<1x96xf32>
    %c0_19 = arith.constant 0 : index
    %c1 = arith.constant 1 : index
    %c0_20 = arith.constant 0 : index
    %37 = vector.load %arg2[%c0_19, %c1, %c0_20] : memref<2x8x128xf32, #tpu.memory_space<vmem>>, vector<1x1x32xf32>
    %38 = vector.shape_cast %37 : vector<1x1x32xf32> to vector<1x32xf32>
    %c0_21 = arith.constant 0 : index
    %c2 = arith.constant 2 : index
    %c0_22 = arith.constant 0 : index
    %39 = vector.load %arg2[%c0_21, %c2, %c0_22] : memref<2x8x128xf32, #tpu.memory_space<vmem>>, vector<1x1x32xf32>
    %40 = vector.shape_cast %39 : vector<1x1x32xf32> to vector<1x32xf32>
    %c0_23 = arith.constant 0 : index
    %c3 = arith.constant 3 : index
    %c0_24 = arith.constant 0 : index
    %41 = vector.load %arg2[%c0_23, %c3, %c0_24] : memref<2x8x128xf32, #tpu.memory_space<vmem>>, vector<1x1x32xf32>
    %42 = vector.shape_cast %41 : vector<1x1x32xf32> to vector<1x32xf32>
    %c0_25 = arith.constant 0 : index
    %c4 = arith.constant 4 : index
    %c0_26 = arith.constant 0 : index
    %43 = vector.load %arg2[%c0_25, %c4, %c0_26] : memref<2x8x128xf32, #tpu.memory_space<vmem>>, vector<1x1x64xf32>
    %44 = vector.shape_cast %43 : vector<1x1x64xf32> to vector<1x64xf32>
    %c0_27 = arith.constant 0 : index
    %c5 = arith.constant 5 : index
    %c0_28 = arith.constant 0 : index
    %45 = vector.load %arg2[%c0_27, %c5, %c0_28] : memref<2x8x128xf32, #tpu.memory_space<vmem>>, vector<1x1x32xf32>
    %46 = vector.shape_cast %45 : vector<1x1x32xf32> to vector<1x32xf32>
    %c0_29 = arith.constant 0 : index
    %c6 = arith.constant 6 : index
    %c0_30 = arith.constant 0 : index
    %47 = vector.load %arg2[%c0_29, %c6, %c0_30] : memref<2x8x128xf32, #tpu.memory_space<vmem>>, vector<1x1x32xf32>
    %48 = vector.shape_cast %47 : vector<1x1x32xf32> to vector<1x32xf32>
    %c0_31 = arith.constant 0 : index
    %c7 = arith.constant 7 : index
    %c0_32 = arith.constant 0 : index
    %49 = vector.load %arg2[%c0_31, %c7, %c0_32] : memref<2x8x128xf32, #tpu.memory_space<vmem>>, vector<1x1x32xf32>
    %50 = vector.shape_cast %49 : vector<1x1x32xf32> to vector<1x32xf32>
    %cst_33 = arith.constant dense<0.000000e+00> : vector<16x96xf32>
    %51 = tpu.matmul %26, %28, %cst_33 {dimension_numbers = #tpu.dot_dimension_numbers<[1], [0], [0], [1], [0, 0, 1, 1], [], []>} : vector<16x32xf32>, vector<32x96xf32>, vector<16x96xf32> -> vector<16x96xf32>
    %52 = vector.broadcast %36 : vector<1x96xf32> to vector<16x96xf32>
    %53 = arith.addf %51, %52 : vector<16x96xf32>
    %54 = vector.extract_strided_slice %53 {offsets = [0, 0], sizes = [16, 16], strides = [1, 1]} : vector<16x96xf32> to vector<16x16xf32>
    %55 = vector.shape_cast %54 : vector<16x16xf32> to vector<2x8x16xf32>
    %56 = vector.extract_strided_slice %53 {offsets = [0, 32], sizes = [16, 16], strides = [1, 1]} : vector<16x96xf32> to vector<16x16xf32>
    %57 = vector.shape_cast %56 : vector<16x16xf32> to vector<2x8x16xf32>
    %58 = vector.extract_strided_slice %53 {offsets = [0, 64], sizes = [16, 16], strides = [1, 1]} : vector<16x96xf32> to vector<16x16xf32>
    %59 = vector.shape_cast %58 : vector<16x16xf32> to vector<2x8x16xf32>
    "tpu.trace_start"() <{level = 10 : i32, message = "bqd,bkd->bqk"}> : () -> ()
    %cst_34 = arith.constant dense<0.000000e+00> : vector<2x8x8xf32>
    %60 = tpu.matmul %55, %57, %cst_34 {dimension_numbers = #tpu.dot_dimension_numbers<[2], [2], [1], [1], [0, 0, 0, 1, 1, 1], [0], [0]>} : vector<2x8x16xf32>, vector<2x8x16xf32>, vector<2x8x8xf32> -> vector<2x8x8xf32>
    "tpu.trace_stop"() : () -> ()
    %cst_35 = arith.constant 2.500000e-01 : f32
    %61 = vector.broadcast %cst_35 : f32 to vector<2x8x8xf32>
    %62 = arith.mulf %60, %61 : vector<2x8x8xf32>
    %cst_36 = arith.constant dense<0xFF800000> : vector<2x8xf32>
    %63 = vector.multi_reduction <maximumf>, %62, %cst_36 [2] : vector<2x8x8xf32> to vector<2x8xf32>
    %64 = vector.shape_cast %63 : vector<2x8xf32> to vector<2x8x1xf32>
    %65 = vector.broadcast %64 : vector<2x8x1xf32> to vector<2x8x8xf32>
    %66 = arith.subf %62, %65 : vector<2x8x8xf32>
    %67 = math.exp %66 : vector<2x8x8xf32>
    %cst_37 = arith.constant dense<0.000000e+00> : vector<2x8xf32>
    %68 = vector.multi_reduction <add>, %67, %cst_37 [2] : vector<2x8x8xf32> to vector<2x8xf32>
    %69 = vector.shape_cast %68 : vector<2x8xf32> to vector<2x8x1xf32>
    %70 = tpu.reciprocal %69 {approx = true} : vector<2x8x1xf32> -> vector<2x8x1xf32>
    %71 = vector.broadcast %70 : vector<2x8x1xf32> to vector<2x8x8xf32>
    %72 = arith.mulf %67, %71 : vector<2x8x8xf32>
    "tpu.trace_start"() <{level = 10 : i32, message = "bqk,bkd->bqd"}> : () -> ()
    %cst_38 = arith.constant dense<0.000000e+00> : vector<2x8x16xf32>
    %73 = tpu.matmul %72, %59, %cst_38 {dimension_numbers = #tpu.dot_dimension_numbers<[2], [1], [1], [2], [0, 0, 0, 1, 1, 2], [0], [0]>} : vector<2x8x8xf32>, vector<2x8x16xf32>, vector<2x8x16xf32> -> vector<2x8x16xf32>
    "tpu.trace_stop"() : () -> ()
    %74 = vector.shape_cast %73 : vector<2x8x16xf32> to vector<16x16xf32>
    %75 = vector.extract_strided_slice %53 {offsets = [0, 16], sizes = [16, 16], strides = [1, 1]} : vector<16x96xf32> to vector<16x16xf32>
    %76 = vector.shape_cast %75 : vector<16x16xf32> to vector<2x8x16xf32>
    %77 = vector.extract_strided_slice %53 {offsets = [0, 48], sizes = [16, 16], strides = [1, 1]} : vector<16x96xf32> to vector<16x16xf32>
    %78 = vector.shape_cast %77 : vector<16x16xf32> to vector<2x8x16xf32>
    %79 = vector.extract_strided_slice %53 {offsets = [0, 80], sizes = [16, 16], strides = [1, 1]} : vector<16x96xf32> to vector<16x16xf32>
    %80 = vector.shape_cast %79 : vector<16x16xf32> to vector<2x8x16xf32>
    "tpu.trace_start"() <{level = 10 : i32, message = "bqd,bkd->bqk"}> : () -> ()
    %cst_39 = arith.constant dense<0.000000e+00> : vector<2x8x8xf32>
    %81 = tpu.matmul %76, %78, %cst_39 {dimension_numbers = #tpu.dot_dimension_numbers<[2], [2], [1], [1], [0, 0, 0, 1, 1, 1], [0], [0]>} : vector<2x8x16xf32>, vector<2x8x16xf32>, vector<2x8x8xf32> -> vector<2x8x8xf32>
    "tpu.trace_stop"() : () -> ()
    %cst_40 = arith.constant 2.500000e-01 : f32
    %82 = vector.broadcast %cst_40 : f32 to vector<2x8x8xf32>
    %83 = arith.mulf %81, %82 : vector<2x8x8xf32>
    %cst_41 = arith.constant dense<0xFF800000> : vector<2x8xf32>
    %84 = vector.multi_reduction <maximumf>, %83, %cst_41 [2] : vector<2x8x8xf32> to vector<2x8xf32>
    %85 = vector.shape_cast %84 : vector<2x8xf32> to vector<2x8x1xf32>
    %86 = vector.broadcast %85 : vector<2x8x1xf32> to vector<2x8x8xf32>
    %87 = arith.subf %83, %86 : vector<2x8x8xf32>
    %88 = math.exp %87 : vector<2x8x8xf32>
    %cst_42 = arith.constant dense<0.000000e+00> : vector<2x8xf32>
    %89 = vector.multi_reduction <add>, %88, %cst_42 [2] : vector<2x8x8xf32> to vector<2x8xf32>
    %90 = vector.shape_cast %89 : vector<2x8xf32> to vector<2x8x1xf32>
    %91 = tpu.reciprocal %90 {approx = true} : vector<2x8x1xf32> -> vector<2x8x1xf32>
    %92 = vector.broadcast %91 : vector<2x8x1xf32> to vector<2x8x8xf32>
    %93 = arith.mulf %88, %92 : vector<2x8x8xf32>
    "tpu.trace_start"() <{level = 10 : i32, message = "bqk,bkd->bqd"}> : () -> ()
    %cst_43 = arith.constant dense<0.000000e+00> : vector<2x8x16xf32>
    %94 = tpu.matmul %93, %80, %cst_43 {dimension_numbers = #tpu.dot_dimension_numbers<[2], [1], [1], [2], [0, 0, 0, 1, 1, 2], [0], [0]>} : vector<2x8x8xf32>, vector<2x8x16xf32>, vector<2x8x16xf32> -> vector<2x8x16xf32>
    "tpu.trace_stop"() : () -> ()
    %95 = vector.shape_cast %94 : vector<2x8x16xf32> to vector<16x16xf32>
    %96 = tpu.concatenate %74, %95 in 1 : vector<16x16xf32>, vector<16x16xf32> -> vector<16x32xf32>
    %cst_44 = arith.constant dense<0.000000e+00> : vector<16x32xf32>
    %97 = tpu.matmul %96, %30, %cst_44 {dimension_numbers = #tpu.dot_dimension_numbers<[1], [0], [0], [1], [0, 0, 1, 1], [], []>} : vector<16x32xf32>, vector<32x32xf32>, vector<16x32xf32> -> vector<16x32xf32>
    %98 = vector.broadcast %38 : vector<1x32xf32> to vector<16x32xf32>
    %99 = arith.addf %97, %98 : vector<16x32xf32>
    %100 = arith.addf %26, %99 : vector<16x32xf32>
    %cst_45 = arith.constant dense<0.000000e+00> : vector<16xf32>
    %101 = vector.multi_reduction <add>, %100, %cst_45 [1] : vector<16x32xf32> to vector<16xf32>
    %102 = vector.shape_cast %101 : vector<16xf32> to vector<16x1xf32>
    %cst_46 = arith.constant 3.200000e+01 : f32
    %103 = vector.broadcast %cst_46 : f32 to vector<16x1xf32>
    %104 = arith.divf %102, %103 : vector<16x1xf32>
    %105 = vector.broadcast %104 : vector<16x1xf32> to vector<16x32xf32>
    %106 = arith.subf %100, %105 : vector<16x32xf32>
    %107 = vector.broadcast %104 : vector<16x1xf32> to vector<16x32xf32>
    %108 = arith.subf %100, %107 : vector<16x32xf32>
    %109 = arith.mulf %106, %108 : vector<16x32xf32>
    %cst_47 = arith.constant dense<0.000000e+00> : vector<16xf32>
    %110 = vector.multi_reduction <add>, %109, %cst_47 [1] : vector<16x32xf32> to vector<16xf32>
    %111 = vector.shape_cast %110 : vector<16xf32> to vector<16x1xf32>
    %cst_48 = arith.constant 3.200000e+01 : f32
    %112 = vector.broadcast %cst_48 : f32 to vector<16x1xf32>
    %113 = arith.divf %111, %112 : vector<16x1xf32>
    %114 = vector.broadcast %104 : vector<16x1xf32> to vector<16x32xf32>
    %115 = arith.subf %100, %114 : vector<16x32xf32>
    %cst_49 = arith.constant 9.99999996E-13 : f32
    %116 = vector.broadcast %cst_49 : f32 to vector<16x1xf32>
    %117 = arith.addf %113, %116 : vector<16x1xf32>
    %118 = math.rsqrt %117 : vector<16x1xf32>
    %119 = vector.broadcast %118 : vector<16x1xf32> to vector<16x32xf32>
    %120 = arith.mulf %115, %119 : vector<16x32xf32>
    %121 = vector.broadcast %40 : vector<1x32xf32> to vector<16x32xf32>
    %122 = arith.mulf %120, %121 : vector<16x32xf32>
    %123 = vector.broadcast %42 : vector<1x32xf32> to vector<16x32xf32>
    %124 = arith.addf %122, %123 : vector<16x32xf32>
    %cst_50 = arith.constant dense<0.000000e+00> : vector<16x64xf32>
    %125 = tpu.matmul %124, %32, %cst_50 {dimension_numbers = #tpu.dot_dimension_numbers<[1], [0], [0], [1], [0, 0, 1, 1], [], []>} : vector<16x32xf32>, vector<32x64xf32>, vector<16x64xf32> -> vector<16x64xf32>
    %126 = vector.broadcast %44 : vector<1x64xf32> to vector<16x64xf32>
    %127 = arith.addf %125, %126 : vector<16x64xf32>
    %128 = arith.mulf %127, %127 : vector<16x64xf32>
    %129 = arith.mulf %127, %128 : vector<16x64xf32>
    %cst_51 = arith.constant 4.471500e-02 : f32
    %130 = vector.broadcast %cst_51 : f32 to vector<16x64xf32>
    %131 = arith.mulf %130, %129 : vector<16x64xf32>
    %132 = arith.addf %127, %131 : vector<16x64xf32>
    %cst_52 = arith.constant 0.797884583 : f32
    %133 = vector.broadcast %cst_52 : f32 to vector<16x64xf32>
    %134 = arith.mulf %133, %132 : vector<16x64xf32>
    %135 = math.tanh %134 : vector<16x64xf32>
    %cst_53 = arith.constant 1.000000e+00 : f32
    %136 = vector.broadcast %cst_53 : f32 to vector<16x64xf32>
    %137 = arith.addf %136, %135 : vector<16x64xf32>
    %cst_54 = arith.constant 5.000000e-01 : f32
    %138 = vector.broadcast %cst_54 : f32 to vector<16x64xf32>
    %139 = arith.mulf %138, %137 : vector<16x64xf32>
    %140 = arith.mulf %127, %139 : vector<16x64xf32>
    %cst_55 = arith.constant dense<0.000000e+00> : vector<16x32xf32>
    %141 = tpu.matmul %140, %34, %cst_55 {dimension_numbers = #tpu.dot_dimension_numbers<[1], [0], [0], [1], [0, 0, 1, 1], [], []>} : vector<16x64xf32>, vector<64x32xf32>, vector<16x32xf32> -> vector<16x32xf32>
    %142 = vector.broadcast %46 : vector<1x32xf32> to vector<16x32xf32>
    %143 = arith.addf %141, %142 : vector<16x32xf32>
    %144 = arith.addf %124, %143 : vector<16x32xf32>
    %cst_56 = arith.constant dense<0.000000e+00> : vector<16xf32>
    %145 = vector.multi_reduction <add>, %144, %cst_56 [1] : vector<16x32xf32> to vector<16xf32>
    %146 = vector.shape_cast %145 : vector<16xf32> to vector<16x1xf32>
    %cst_57 = arith.constant 3.200000e+01 : f32
    %147 = vector.broadcast %cst_57 : f32 to vector<16x1xf32>
    %148 = arith.divf %146, %147 : vector<16x1xf32>
    %149 = vector.broadcast %148 : vector<16x1xf32> to vector<16x32xf32>
    %150 = arith.subf %144, %149 : vector<16x32xf32>
    %151 = vector.broadcast %148 : vector<16x1xf32> to vector<16x32xf32>
    %152 = arith.subf %144, %151 : vector<16x32xf32>
    %153 = arith.mulf %150, %152 : vector<16x32xf32>
    %cst_58 = arith.constant dense<0.000000e+00> : vector<16xf32>
    %154 = vector.multi_reduction <add>, %153, %cst_58 [1] : vector<16x32xf32> to vector<16xf32>
    %155 = vector.shape_cast %154 : vector<16xf32> to vector<16x1xf32>
    %cst_59 = arith.constant 3.200000e+01 : f32
    %156 = vector.broadcast %cst_59 : f32 to vector<16x1xf32>
    %157 = arith.divf %155, %156 : vector<16x1xf32>
    %158 = vector.broadcast %148 : vector<16x1xf32> to vector<16x32xf32>
    %159 = arith.subf %144, %158 : vector<16x32xf32>
    %cst_60 = arith.constant 9.99999996E-13 : f32
    %160 = vector.broadcast %cst_60 : f32 to vector<16x1xf32>
    %161 = arith.addf %157, %160 : vector<16x1xf32>
    %162 = math.rsqrt %161 : vector<16x1xf32>
    %163 = vector.broadcast %162 : vector<16x1xf32> to vector<16x32xf32>
    %164 = arith.mulf %159, %163 : vector<16x32xf32>
    %165 = vector.broadcast %48 : vector<1x32xf32> to vector<16x32xf32>
    %166 = arith.mulf %164, %165 : vector<16x32xf32>
    %167 = vector.broadcast %50 : vector<1x32xf32> to vector<16x32xf32>
    %168 = arith.addf %166, %167 : vector<16x32xf32>
    %c1_61 = arith.constant 1 : index
    %c0_62 = arith.constant 0 : index
    %c0_63 = arith.constant 0 : index
    %169 = vector.load %arg1[%c1_61, %c0_62, %c0_63] : memref<2x96x192xf32, #tpu.memory_space<vmem>>, vector<1x32x96xf32>
    %170 = vector.shape_cast %169 : vector<1x32x96xf32> to vector<32x96xf32>
    %c1_64 = arith.constant 1 : index
    %c0_65 = arith.constant 0 : index
    %c96_66 = arith.constant 96 : index
    %171 = vector.load %arg1[%c1_64, %c0_65, %c96_66] : memref<2x96x192xf32, #tpu.memory_space<vmem>>, vector<1x32x32xf32>
    %172 = vector.shape_cast %171 : vector<1x32x32xf32> to vector<32x32xf32>
    %c1_67 = arith.constant 1 : index
    %c0_68 = arith.constant 0 : index
    %c128_69 = arith.constant 128 : index
    %173 = vector.load %arg1[%c1_67, %c0_68, %c128_69] : memref<2x96x192xf32, #tpu.memory_space<vmem>>, vector<1x32x64xf32>
    %174 = vector.shape_cast %173 : vector<1x32x64xf32> to vector<32x64xf32>
    %c1_70 = arith.constant 1 : index
    %c32_71 = arith.constant 32 : index
    %c0_72 = arith.constant 0 : index
    %175 = vector.load %arg1[%c1_70, %c32_71, %c0_72] : memref<2x96x192xf32, #tpu.memory_space<vmem>>, vector<1x64x32xf32>
    %176 = vector.shape_cast %175 : vector<1x64x32xf32> to vector<64x32xf32>
    %c1_73 = arith.constant 1 : index
    %c0_74 = arith.constant 0 : index
    %c0_75 = arith.constant 0 : index
    %177 = vector.load %arg2[%c1_73, %c0_74, %c0_75] : memref<2x8x128xf32, #tpu.memory_space<vmem>>, vector<1x1x96xf32>
    %178 = vector.shape_cast %177 : vector<1x1x96xf32> to vector<1x96xf32>
    %c1_76 = arith.constant 1 : index
    %c1_77 = arith.constant 1 : index
    %c0_78 = arith.constant 0 : index
    %179 = vector.load %arg2[%c1_76, %c1_77, %c0_78] : memref<2x8x128xf32, #tpu.memory_space<vmem>>, vector<1x1x32xf32>
    %180 = vector.shape_cast %179 : vector<1x1x32xf32> to vector<1x32xf32>
    %c1_79 = arith.constant 1 : index
    %c2_80 = arith.constant 2 : index
    %c0_81 = arith.constant 0 : index
    %181 = vector.load %arg2[%c1_79, %c2_80, %c0_81] : memref<2x8x128xf32, #tpu.memory_space<vmem>>, vector<1x1x32xf32>
    %182 = vector.shape_cast %181 : vector<1x1x32xf32> to vector<1x32xf32>
    %c1_82 = arith.constant 1 : index
    %c3_83 = arith.constant 3 : index
    %c0_84 = arith.constant 0 : index
    %183 = vector.load %arg2[%c1_82, %c3_83, %c0_84] : memref<2x8x128xf32, #tpu.memory_space<vmem>>, vector<1x1x32xf32>
    %184 = vector.shape_cast %183 : vector<1x1x32xf32> to vector<1x32xf32>
    %c1_85 = arith.constant 1 : index
    %c4_86 = arith.constant 4 : index
    %c0_87 = arith.constant 0 : index
    %185 = vector.load %arg2[%c1_85, %c4_86, %c0_87] : memref<2x8x128xf32, #tpu.memory_space<vmem>>, vector<1x1x64xf32>
    %186 = vector.shape_cast %185 : vector<1x1x64xf32> to vector<1x64xf32>
    %c1_88 = arith.constant 1 : index
    %c5_89 = arith.constant 5 : index
    %c0_90 = arith.constant 0 : index
    %187 = vector.load %arg2[%c1_88, %c5_89, %c0_90] : memref<2x8x128xf32, #tpu.memory_space<vmem>>, vector<1x1x32xf32>
    %188 = vector.shape_cast %187 : vector<1x1x32xf32> to vector<1x32xf32>
    %c1_91 = arith.constant 1 : index
    %c6_92 = arith.constant 6 : index
    %c0_93 = arith.constant 0 : index
    %189 = vector.load %arg2[%c1_91, %c6_92, %c0_93] : memref<2x8x128xf32, #tpu.memory_space<vmem>>, vector<1x1x32xf32>
    %190 = vector.shape_cast %189 : vector<1x1x32xf32> to vector<1x32xf32>
    %c1_94 = arith.constant 1 : index
    %c7_95 = arith.constant 7 : index
    %c0_96 = arith.constant 0 : index
    %191 = vector.load %arg2[%c1_94, %c7_95, %c0_96] : memref<2x8x128xf32, #tpu.memory_space<vmem>>, vector<1x1x32xf32>
    %192 = vector.shape_cast %191 : vector<1x1x32xf32> to vector<1x32xf32>
    %cst_97 = arith.constant dense<0.000000e+00> : vector<16x96xf32>
    %193 = tpu.matmul %168, %170, %cst_97 {dimension_numbers = #tpu.dot_dimension_numbers<[1], [0], [0], [1], [0, 0, 1, 1], [], []>} : vector<16x32xf32>, vector<32x96xf32>, vector<16x96xf32> -> vector<16x96xf32>
    %194 = vector.broadcast %178 : vector<1x96xf32> to vector<16x96xf32>
    %195 = arith.addf %193, %194 : vector<16x96xf32>
    %196 = vector.extract_strided_slice %195 {offsets = [0, 0], sizes = [16, 16], strides = [1, 1]} : vector<16x96xf32> to vector<16x16xf32>
    %197 = vector.shape_cast %196 : vector<16x16xf32> to vector<2x8x16xf32>
    %198 = vector.extract_strided_slice %195 {offsets = [0, 32], sizes = [16, 16], strides = [1, 1]} : vector<16x96xf32> to vector<16x16xf32>
    %199 = vector.shape_cast %198 : vector<16x16xf32> to vector<2x8x16xf32>
    %200 = vector.extract_strided_slice %195 {offsets = [0, 64], sizes = [16, 16], strides = [1, 1]} : vector<16x96xf32> to vector<16x16xf32>
    %201 = vector.shape_cast %200 : vector<16x16xf32> to vector<2x8x16xf32>
    "tpu.trace_start"() <{level = 10 : i32, message = "bqd,bkd->bqk"}> : () -> ()
    %cst_98 = arith.constant dense<0.000000e+00> : vector<2x8x8xf32>
    %202 = tpu.matmul %197, %199, %cst_98 {dimension_numbers = #tpu.dot_dimension_numbers<[2], [2], [1], [1], [0, 0, 0, 1, 1, 1], [0], [0]>} : vector<2x8x16xf32>, vector<2x8x16xf32>, vector<2x8x8xf32> -> vector<2x8x8xf32>
    "tpu.trace_stop"() : () -> ()
    %cst_99 = arith.constant 2.500000e-01 : f32
    %203 = vector.broadcast %cst_99 : f32 to vector<2x8x8xf32>
    %204 = arith.mulf %202, %203 : vector<2x8x8xf32>
    %cst_100 = arith.constant dense<0xFF800000> : vector<2x8xf32>
    %205 = vector.multi_reduction <maximumf>, %204, %cst_100 [2] : vector<2x8x8xf32> to vector<2x8xf32>
    %206 = vector.shape_cast %205 : vector<2x8xf32> to vector<2x8x1xf32>
    %207 = vector.broadcast %206 : vector<2x8x1xf32> to vector<2x8x8xf32>
    %208 = arith.subf %204, %207 : vector<2x8x8xf32>
    %209 = math.exp %208 : vector<2x8x8xf32>
    %cst_101 = arith.constant dense<0.000000e+00> : vector<2x8xf32>
    %210 = vector.multi_reduction <add>, %209, %cst_101 [2] : vector<2x8x8xf32> to vector<2x8xf32>
    %211 = vector.shape_cast %210 : vector<2x8xf32> to vector<2x8x1xf32>
    %212 = tpu.reciprocal %211 {approx = true} : vector<2x8x1xf32> -> vector<2x8x1xf32>
    %213 = vector.broadcast %212 : vector<2x8x1xf32> to vector<2x8x8xf32>
    %214 = arith.mulf %209, %213 : vector<2x8x8xf32>
    "tpu.trace_start"() <{level = 10 : i32, message = "bqk,bkd->bqd"}> : () -> ()
    %cst_102 = arith.constant dense<0.000000e+00> : vector<2x8x16xf32>
    %215 = tpu.matmul %214, %201, %cst_102 {dimension_numbers = #tpu.dot_dimension_numbers<[2], [1], [1], [2], [0, 0, 0, 1, 1, 2], [0], [0]>} : vector<2x8x8xf32>, vector<2x8x16xf32>, vector<2x8x16xf32> -> vector<2x8x16xf32>
    "tpu.trace_stop"() : () -> ()
    %216 = vector.shape_cast %215 : vector<2x8x16xf32> to vector<16x16xf32>
    %217 = vector.extract_strided_slice %195 {offsets = [0, 16], sizes = [16, 16], strides = [1, 1]} : vector<16x96xf32> to vector<16x16xf32>
    %218 = vector.shape_cast %217 : vector<16x16xf32> to vector<2x8x16xf32>
    %219 = vector.extract_strided_slice %195 {offsets = [0, 48], sizes = [16, 16], strides = [1, 1]} : vector<16x96xf32> to vector<16x16xf32>
    %220 = vector.shape_cast %219 : vector<16x16xf32> to vector<2x8x16xf32>
    %221 = vector.extract_strided_slice %195 {offsets = [0, 80], sizes = [16, 16], strides = [1, 1]} : vector<16x96xf32> to vector<16x16xf32>
    %222 = vector.shape_cast %221 : vector<16x16xf32> to vector<2x8x16xf32>
    "tpu.trace_start"() <{level = 10 : i32, message = "bqd,bkd->bqk"}> : () -> ()
    %cst_103 = arith.constant dense<0.000000e+00> : vector<2x8x8xf32>
    %223 = tpu.matmul %218, %220, %cst_103 {dimension_numbers = #tpu.dot_dimension_numbers<[2], [2], [1], [1], [0, 0, 0, 1, 1, 1], [0], [0]>} : vector<2x8x16xf32>, vector<2x8x16xf32>, vector<2x8x8xf32> -> vector<2x8x8xf32>
    "tpu.trace_stop"() : () -> ()
    %cst_104 = arith.constant 2.500000e-01 : f32
    %224 = vector.broadcast %cst_104 : f32 to vector<2x8x8xf32>
    %225 = arith.mulf %223, %224 : vector<2x8x8xf32>
    %cst_105 = arith.constant dense<0xFF800000> : vector<2x8xf32>
    %226 = vector.multi_reduction <maximumf>, %225, %cst_105 [2] : vector<2x8x8xf32> to vector<2x8xf32>
    %227 = vector.shape_cast %226 : vector<2x8xf32> to vector<2x8x1xf32>
    %228 = vector.broadcast %227 : vector<2x8x1xf32> to vector<2x8x8xf32>
    %229 = arith.subf %225, %228 : vector<2x8x8xf32>
    %230 = math.exp %229 : vector<2x8x8xf32>
    %cst_106 = arith.constant dense<0.000000e+00> : vector<2x8xf32>
    %231 = vector.multi_reduction <add>, %230, %cst_106 [2] : vector<2x8x8xf32> to vector<2x8xf32>
    %232 = vector.shape_cast %231 : vector<2x8xf32> to vector<2x8x1xf32>
    %233 = tpu.reciprocal %232 {approx = true} : vector<2x8x1xf32> -> vector<2x8x1xf32>
    %234 = vector.broadcast %233 : vector<2x8x1xf32> to vector<2x8x8xf32>
    %235 = arith.mulf %230, %234 : vector<2x8x8xf32>
    "tpu.trace_start"() <{level = 10 : i32, message = "bqk,bkd->bqd"}> : () -> ()
    %cst_107 = arith.constant dense<0.000000e+00> : vector<2x8x16xf32>
    %236 = tpu.matmul %235, %222, %cst_107 {dimension_numbers = #tpu.dot_dimension_numbers<[2], [1], [1], [2], [0, 0, 0, 1, 1, 2], [0], [0]>} : vector<2x8x8xf32>, vector<2x8x16xf32>, vector<2x8x16xf32> -> vector<2x8x16xf32>
    "tpu.trace_stop"() : () -> ()
    %237 = vector.shape_cast %236 : vector<2x8x16xf32> to vector<16x16xf32>
    %238 = tpu.concatenate %216, %237 in 1 : vector<16x16xf32>, vector<16x16xf32> -> vector<16x32xf32>
    %cst_108 = arith.constant dense<0.000000e+00> : vector<16x32xf32>
    %239 = tpu.matmul %238, %172, %cst_108 {dimension_numbers = #tpu.dot_dimension_numbers<[1], [0], [0], [1], [0, 0, 1, 1], [], []>} : vector<16x32xf32>, vector<32x32xf32>, vector<16x32xf32> -> vector<16x32xf32>
    %240 = vector.broadcast %180 : vector<1x32xf32> to vector<16x32xf32>
    %241 = arith.addf %239, %240 : vector<16x32xf32>
    %242 = arith.addf %168, %241 : vector<16x32xf32>
    %cst_109 = arith.constant dense<0.000000e+00> : vector<16xf32>
    %243 = vector.multi_reduction <add>, %242, %cst_109 [1] : vector<16x32xf32> to vector<16xf32>
    %244 = vector.shape_cast %243 : vector<16xf32> to vector<16x1xf32>
    %cst_110 = arith.constant 3.200000e+01 : f32
    %245 = vector.broadcast %cst_110 : f32 to vector<16x1xf32>
    %246 = arith.divf %244, %245 : vector<16x1xf32>
    %247 = vector.broadcast %246 : vector<16x1xf32> to vector<16x32xf32>
    %248 = arith.subf %242, %247 : vector<16x32xf32>
    %249 = vector.broadcast %246 : vector<16x1xf32> to vector<16x32xf32>
    %250 = arith.subf %242, %249 : vector<16x32xf32>
    %251 = arith.mulf %248, %250 : vector<16x32xf32>
    %cst_111 = arith.constant dense<0.000000e+00> : vector<16xf32>
    %252 = vector.multi_reduction <add>, %251, %cst_111 [1] : vector<16x32xf32> to vector<16xf32>
    %253 = vector.shape_cast %252 : vector<16xf32> to vector<16x1xf32>
    %cst_112 = arith.constant 3.200000e+01 : f32
    %254 = vector.broadcast %cst_112 : f32 to vector<16x1xf32>
    %255 = arith.divf %253, %254 : vector<16x1xf32>
    %256 = vector.broadcast %246 : vector<16x1xf32> to vector<16x32xf32>
    %257 = arith.subf %242, %256 : vector<16x32xf32>
    %cst_113 = arith.constant 9.99999996E-13 : f32
    %258 = vector.broadcast %cst_113 : f32 to vector<16x1xf32>
    %259 = arith.addf %255, %258 : vector<16x1xf32>
    %260 = math.rsqrt %259 : vector<16x1xf32>
    %261 = vector.broadcast %260 : vector<16x1xf32> to vector<16x32xf32>
    %262 = arith.mulf %257, %261 : vector<16x32xf32>
    %263 = vector.broadcast %182 : vector<1x32xf32> to vector<16x32xf32>
    %264 = arith.mulf %262, %263 : vector<16x32xf32>
    %265 = vector.broadcast %184 : vector<1x32xf32> to vector<16x32xf32>
    %266 = arith.addf %264, %265 : vector<16x32xf32>
    %cst_114 = arith.constant dense<0.000000e+00> : vector<16x64xf32>
    %267 = tpu.matmul %266, %174, %cst_114 {dimension_numbers = #tpu.dot_dimension_numbers<[1], [0], [0], [1], [0, 0, 1, 1], [], []>} : vector<16x32xf32>, vector<32x64xf32>, vector<16x64xf32> -> vector<16x64xf32>
    %268 = vector.broadcast %186 : vector<1x64xf32> to vector<16x64xf32>
    %269 = arith.addf %267, %268 : vector<16x64xf32>
    %270 = arith.mulf %269, %269 : vector<16x64xf32>
    %271 = arith.mulf %269, %270 : vector<16x64xf32>
    %cst_115 = arith.constant 4.471500e-02 : f32
    %272 = vector.broadcast %cst_115 : f32 to vector<16x64xf32>
    %273 = arith.mulf %272, %271 : vector<16x64xf32>
    %274 = arith.addf %269, %273 : vector<16x64xf32>
    %cst_116 = arith.constant 0.797884583 : f32
    %275 = vector.broadcast %cst_116 : f32 to vector<16x64xf32>
    %276 = arith.mulf %275, %274 : vector<16x64xf32>
    %277 = math.tanh %276 : vector<16x64xf32>
    %cst_117 = arith.constant 1.000000e+00 : f32
    %278 = vector.broadcast %cst_117 : f32 to vector<16x64xf32>
    %279 = arith.addf %278, %277 : vector<16x64xf32>
    %cst_118 = arith.constant 5.000000e-01 : f32
    %280 = vector.broadcast %cst_118 : f32 to vector<16x64xf32>
    %281 = arith.mulf %280, %279 : vector<16x64xf32>
    %282 = arith.mulf %269, %281 : vector<16x64xf32>
    %cst_119 = arith.constant dense<0.000000e+00> : vector<16x32xf32>
    %283 = tpu.matmul %282, %176, %cst_119 {dimension_numbers = #tpu.dot_dimension_numbers<[1], [0], [0], [1], [0, 0, 1, 1], [], []>} : vector<16x64xf32>, vector<64x32xf32>, vector<16x32xf32> -> vector<16x32xf32>
    %284 = vector.broadcast %188 : vector<1x32xf32> to vector<16x32xf32>
    %285 = arith.addf %283, %284 : vector<16x32xf32>
    %286 = arith.addf %266, %285 : vector<16x32xf32>
    %cst_120 = arith.constant dense<0.000000e+00> : vector<16xf32>
    %287 = vector.multi_reduction <add>, %286, %cst_120 [1] : vector<16x32xf32> to vector<16xf32>
    %288 = vector.shape_cast %287 : vector<16xf32> to vector<16x1xf32>
    %cst_121 = arith.constant 3.200000e+01 : f32
    %289 = vector.broadcast %cst_121 : f32 to vector<16x1xf32>
    %290 = arith.divf %288, %289 : vector<16x1xf32>
    %291 = vector.broadcast %290 : vector<16x1xf32> to vector<16x32xf32>
    %292 = arith.subf %286, %291 : vector<16x32xf32>
    %293 = vector.broadcast %290 : vector<16x1xf32> to vector<16x32xf32>
    %294 = arith.subf %286, %293 : vector<16x32xf32>
    %295 = arith.mulf %292, %294 : vector<16x32xf32>
    %cst_122 = arith.constant dense<0.000000e+00> : vector<16xf32>
    %296 = vector.multi_reduction <add>, %295, %cst_122 [1] : vector<16x32xf32> to vector<16xf32>
    %297 = vector.shape_cast %296 : vector<16xf32> to vector<16x1xf32>
    %cst_123 = arith.constant 3.200000e+01 : f32
    %298 = vector.broadcast %cst_123 : f32 to vector<16x1xf32>
    %299 = arith.divf %297, %298 : vector<16x1xf32>
    %300 = vector.broadcast %290 : vector<16x1xf32> to vector<16x32xf32>
    %301 = arith.subf %286, %300 : vector<16x32xf32>
    %cst_124 = arith.constant 9.99999996E-13 : f32
    %302 = vector.broadcast %cst_124 : f32 to vector<16x1xf32>
    %303 = arith.addf %299, %302 : vector<16x1xf32>
    %304 = math.rsqrt %303 : vector<16x1xf32>
    %305 = vector.broadcast %304 : vector<16x1xf32> to vector<16x32xf32>
    %306 = arith.mulf %301, %305 : vector<16x32xf32>
    %307 = vector.broadcast %190 : vector<1x32xf32> to vector<16x32xf32>
    %308 = arith.mulf %306, %307 : vector<16x32xf32>
    %309 = vector.broadcast %192 : vector<1x32xf32> to vector<16x32xf32>
    %310 = arith.addf %308, %309 : vector<16x32xf32>
    %c32_125 = arith.constant 32 : index
    %c0_126 = arith.constant 0 : index
    %311 = vector.load %arg3[%c32_125, %c0_126] : memref<40x128xf32, #tpu.memory_space<vmem>>, vector<2x16xf32>
    %cst_127 = arith.constant dense<0.000000e+00> : vector<2x32xf32>
    %312 = tpu.matmul %311, %310, %cst_127 {dimension_numbers = #tpu.dot_dimension_numbers<[1], [0], [0], [1], [0, 0, 1, 1], [], []>} : vector<2x16xf32>, vector<16x32xf32>, vector<2x32xf32> -> vector<2x32xf32>
    %c0_128 = arith.constant 0 : index
    %c0_129 = arith.constant 0 : index
    %313 = vector.load %arg3[%c0_128, %c0_129] : memref<40x128xf32, #tpu.memory_space<vmem>>, vector<32x128xf32>
    %c36 = arith.constant 36 : index
    %c0_130 = arith.constant 0 : index
    %314 = vector.load %arg3[%c36, %c0_130] : memref<40x128xf32, #tpu.memory_space<vmem>>, vector<1x128xf32>
    %cst_131 = arith.constant dense<0.000000e+00> : vector<2x128xf32>
    %315 = tpu.matmul %312, %313, %cst_131 {dimension_numbers = #tpu.dot_dimension_numbers<[1], [0], [0], [1], [0, 0, 1, 1], [], []>} : vector<2x32xf32>, vector<32x128xf32>, vector<2x128xf32> -> vector<2x128xf32>
    %316 = vector.broadcast %314 : vector<1x128xf32> to vector<2x128xf32>
    %317 = arith.addf %315, %316 : vector<2x128xf32>
    %cst_132 = arith.constant 0.000000e+00 : f32
    %318 = vector.broadcast %cst_132 : f32 to vector<2x96xf32>
    %319 = tpu.concatenate %312, %318, %317 in 1 : vector<2x32xf32>, vector<2x96xf32>, vector<2x128xf32> -> vector<2x256xf32>
    %c0_133 = arith.constant 0 : index
    %c0_134 = arith.constant 0 : index
    %320 = vector.load %arg4[%c0_133, %c0_134] : memref<2x256xf32, #tpu.memory_space<vmem>>, vector<2x256xf32>
    tpu.vector_store %arg4[%c0_133, %c0_134], %319 {strides = array<i32>} : memref<2x256xf32, #tpu.memory_space<vmem>>, vector<2x256xf32>,
    return
  }
}

</mosaic_0001>

<bundles_post_ra>
// kernel: bert_for_model_forward.1
= control target key start
LH: loop header
LB: loop body
LE: loop exit
PB: predicated region body
PF: predicated region fallthrough
CT: control target
= control target key end

     0   :  { %9 = vsyncpa [#allocation3], 0  ;;  %s3127_s15 = smov [#allocation2]   ;;  %s3516_s0 = inlined_call_operand.vmem [shape: f32[16,32], index: 0, kind: input, shape index: {}]   ;;  %s3517_s1 = inlined_call_operand.hbm [shape: f32[2,96,192], index: 1, kind: input, shape index: {}]   ;;  %s3518_s2 = inlined_call_operand.vmem [shape: f32[2,8,128], index: 2, kind: input, shape index: {}]   ;;  %s3519_s3 = inlined_call_operand.vmem [shape: f32[40,128], index: 3, kind: input, shape index: {}]   ;;  %s3520_s4 = inlined_call_operand.vmem [shape: f32[2,256], index: 4, kind: output, shape index: {}]  }
   0x1   :  { %s17_s16 = sshll.u32 %s3127_s15, 4  ;;  %s3103_s19 = scalar_lea.hbm %s3517_s1, 6144  ;;  %s18_s16 = int_to_ptr.vmem [resolvable:$true] %s17_s16 }
   0x2   :  { %p3104_p0 = scmp.ne.s32.totalorder %s3517_s1, %s3103_s19  ;;  %p3107_p1 = scmp.lt.u32.totalorder %s3103_s19, %s3517_s1 }
   0x4   :  { %p3109_p2 = pnand %p3107_p1, %p3104_p0 }
   0x6   :  { %3112 = shalt.err (!%p3109_p2)
}
   0x7   :  { %s3113_s24 = scalar_lea.vmem %s18_s16, 6144  ;;  %p3118_p4 = scmp.lt.s32.totalorder %s18_s16, %s18_s16 }
   0x8   :  { %p3114_p3 = scmp.ne.s32.totalorder %s18_s16, %s3113_s24  ;;  %p3119_p5 = scmp.lt.s32.totalorder %s3113_s24, %s3113_s24 }
   0xa   :  { %p3120_p6 = por %p3119_p5, %p3118_p4 }
   0xc   :  { %p3121_p7 = pnand %p3120_p6, %p3114_p3 }
   0xe   :  { %3124 = shalt.err (!%p3121_p7)
}
   0xf   :  { %s3128_s25 = smov 256   ;;  %s3129_s26 = smov 16  }
  0x10   :  { %23 = dma.hbm_to_vmem [thread:$0]  %s3517_s1, 6144, %s18_s16, [#allocation3], %s3128_s25, %s3128_s25, %s3129_s26  }
  0x11   :  { %3125 = dma.done.wait [#allocation3], 6144  }
  0x12   :  { %3126 = vsyncadd [#allocation3], 4294961152  ;;  %vm35_vm0 = vcmask 261120   ;;  %v33_v0 = vld [vmem:[%s3516_s0] sm:$0xff]  ;;  %v34_v1 = vld [vmem:[%s3516_s0 + $0x8] sm:$0xff]  ;;  %v3130_v37 = vmov 0.0  }
  0x13   :  { %v36_v2 = vsel %vm35_vm0, %v33_v0, 0.0  ;;  %v39_v3 = vsel %vm35_vm0, %v34_v1, 0.0  ;;  %v3187_v14 = vld [vmem:[#allocation2] sm:$0xff]  ;;  %v3189_v15 = vld [vmem:[#allocation2 + $0x10] sm:$0xff]  ;;  %2731 = vmatprep.subr.mxu1 %v3130_v37  ;;  %vm3131_vm1 = vmmov 0   ;;  %s3132_s11 = smov 96  }
  0x14   :  { %37 = vadd.xlane.f32.xlu0 %v36_v2  ;;  %v3191_v16 = vld [vmem:[#allocation2 + $0x20] sm:$0xff]  ;;  %v3023_v17 = vpack.i.bf16 %v3189_v15, %v3187_v14  ;;  %v2922_v18 = vpack.c.bf16 %v3189_v15, %v3187_v14  ;;  %v3197_v19 = vld [vmem:[#allocation2 + $0x30] sm:$0xff]  ;;  %2733 = vmatprep.mubr.msk.f32.mxu1 %vm3131_vm1, %v3130_v37  ;;  %vm187_vm2 = vcmask 130048   ;;  %vm341_vm3 = vcmask 64512   ;;  %s3133_s12 = smov 64   ;;  %s3134_s13 = smov 80  }
  0x15   :  { %v2926_v20 = vpack.c.bf16 %v3197_v19, %v3191_v16  ;;  %v2554_v28 = vld [vmem:[%s3519_s3 + $0x22] ss:$0 sm:$0xff]  ;;  %v2555_v30 = vld [vmem:[%s3519_s3 + $0x23] ss:$0 sm:$0xff]  ;;  %v2556_v38 = vld [vmem:[%s3518_s2] ss:$0 sm:$0xff] }
  0x16   :  { %2923 = vmatprep.subr.bf16.mxu0 %v2922_v18  ;;  %s3135_s14 = smov 112   ;;  %s3136_s15 = smov 48   ;;  %vm1106_vm4 = vcmask 523264  }
  0x17   :  { %2925 = vmatpush3.bf16.msra.mxu0 %v2922_v18  ;;  %s3137_s16 = smov 32  }
  0x18   :  { %40 = vadd.xlane.f32.xlu0 %v39_v3  ;;  %2927 = vmatprep.subr.bf16.mxu0 %v2926_v20 }
  0x1b   :  { %2929 = vmatpush3.bf16.msra.mxu0 %v2926_v20 }
  0x1c   :  { %2741 = vmatprep.subr.mxu0 %v3130_v37 }
  0xa1   :  { %v38_v4 = vpop.xlane.xlu0 %37 }
  0xa2   :  { %v43_v5 = vmul.f32 0.03125, %v38_v4 }
  0xa4   :  { %v45_v6 = vsub.f32 %v33_v0, %v43_v5 }
  0xa5   :  { %v41_v7 = vpop.xlane.xlu0 %40 }
  0xa6   :  { %v44_v8 = vmul.f32 0.03125, %v41_v7  ;;  %v47_v9 = vmul.f32 %v45_v6, %v45_v6 }
  0xa8   :  { %v46_v10 = vsub.f32 %v34_v1, %v44_v8  ;;  %v49_v11 = vsel %vm35_vm0, %v47_v9, 0.0 }
  0xa9   :  { %50 = vadd.xlane.f32.xlu1 %v49_v11 }
  0xaa   :  { %v48_v12 = vmul.f32 %v46_v10, %v46_v10 }
  0xac   :  { %v52_v13 = vsel %vm35_vm0, %v48_v12, 0.0 }
  0xad   :  { %53 = vadd.xlane.f32.xlu1 %v52_v13 }
 0x136   :  { %v51_v21 = vpop.xlane.xlu1 %50 }
 0x137   :  { %v55_v22 = vmul.f32 0.03125, %v51_v21 }
 0x139   :  { %v57_v23 = vadd.f32 1e-12, %v55_v22 }
 0x13a   :  { %v54_v24 = vpop.xlane.xlu1 %53 }
 0x13b   :  { %3043 = vrsqrt.f32 %v57_v23  ;;  %v56_v25 = vmul.f32 0.03125, %v54_v24 }
 0x13d   :  { %v58_v26 = vadd.f32 1e-12, %v56_v25 }
 0x13f   :  { %3045 = vrsqrt.f32 %v58_v26 }
 0x145   :  { %v3044_v27 = vpop.eup %3043 }
 0x146   :  { %v61_v29 = vmul.f32 %v3044_v27, %v45_v6 }
 0x148   :  { %v67_v31 = vmul.f32 %v2554_v28, %v61_v29 }
 0x149   :  { %v3046_v32 = vpop.eup %3045 }
 0x14a   :  { %v62_v33 = vmul.f32 %v3046_v32, %v46_v10  ;;  %v3207_v34 = vadd.f32 %v2555_v30, %v67_v31 }
 0x14c   :  { %v68_v35 = vmul.f32 %v2554_v28, %v62_v33  ;;  %2728 = vmatprep.mubr.msk.f32.mxu0 %vm35_vm0, %v3207_v34 }
 0x14e   :  { %v3211_v36 = vadd.f32 %v2555_v30, %v68_v35 }
 0x150   :  { %2729 = vmatmul.mubr.msk.f32.vlgmr.msra.gmra.mrb[0].mxu0 %vm35_vm0, %v3211_v36 }
 0x151   :  { %2743 = vmatprep.mubr.msk.f32.mxu0 %vm3131_vm1, %v3130_v37 }
 0x223   :  { %v2730_v39 = vpop.f32.mrb[0].mxu0 }
 0x224   :  { %v3224_v40 = vadd.f32 %v2730_v39, %v2556_v38  ;;  %v175_v41 = vpop.f32.mrb[1].mxu0 }
 0x225   :  { %v3226_v42 = vadd.f32 %v2556_v38, %v175_v41 }
 0x226   :  { %263 = vrot.lane.b32.xlu1 %v3224_v40, %s3132_s11 }
 0x227   :  { %185 = vrot.lane.b32.xlu0 %v3226_v42, %s3132_s11 }
 0x298   :  { %v264_v44 = vpop.permute.xlu1 %263 }
 0x299   :  { %v186_v43 = vpop.permute.xlu0 %185 }
 0x29a   :  { %2732 = vmatpush3.xpose.msk.msra.mxu1 %vm187_vm2, %v186_v43 }
 0x29b   :  { %2736 = vmatprep.subr.mxu1 %v3130_v37 }
 0x29d   :  { %2734 = vmatmul.mubr.msk.f32.vlgmr.msra.gmra.mrb[0].mxu1 %vm187_vm2, %v3226_v42 }
 0x29e   :  { %2737 = vmatpush3.xpose.msk.msra.mxu1 %vm187_vm2, %v264_v44  ;;  %2738 = vmatprep.mubr.msk.f32.mxu1 %vm3131_vm1, %v3130_v37 }
 0x29f   :  { %2746 = vmatprep.subr.mxu1 %v3130_v37 }
 0x2a1   :  { %2739 = vmatmul.mubr.msk.f32.vlgmr.msra.gmra.mrb[2].mxu1 %vm187_vm2, %v3224_v40 }
 0x2a2   :  { %2748 = vmatprep.mubr.msk.f32.mxu1 %vm3131_vm1, %v3130_v37 }
 0x370   :  { %v258_v45 = vpop.f32.mrb[0].mxu1 }
 0x371   :  { %v339_v46 = vmul.f32 0.25, %v258_v45  ;;  %v2735_v47 = vpop.f32.mrb[1].mxu1 }
 0x373   :  { %v342_v48 = vsel %vm341_vm3, %v339_v46, -inf }
 0x374   :  { %343 = vmax.xlane.f32.xlu1 %v342_v48  ;;  %v335_v49 = vpop.f32.mrb[2].mxu1 }
 0x375   :  { %v340_v50 = vmul.f32 0.25, %v335_v49  ;;  %v2740_v51 = vpop.f32.mrb[3].mxu1 }
 0x377   :  { %v345_v52 = vsel %vm341_vm3, %v340_v50, -inf }
 0x378   :  { %346 = vmax.xlane.f32.xlu0 %v345_v52 }
 0x385   :  { %440 = vrot.lane.b32.xlu1 %v3224_v40, %s3133_s12 }
 0x389   :  { %518 = vrot.lane.b32.xlu1 %v3226_v42, %s3134_s13 }
 0x38d   :  { %596 = vrot.lane.b32.xlu1 %v3224_v40, %s3134_s13 }
 0x38e   :  { %364 = vrot.lane.b32.xlu0 %v3226_v42, %s3133_s12 }
 0x401   :  { %v344_v53 = vpop.xlane.xlu1 %343 }
 0x402   :  { %v348_v54 = vsub.f32 %v339_v46, %v344_v53 }
 0x404   :  { %v350_v55 = vmul.f32 1.442695, %v348_v54 }
 0x405   :  { %v441_v56 = vpop.permute.xlu1 %440  ;;  %v347_v57 = vpop.xlane.xlu0 %346 }
 0x406   :  { %3047 = vpow2.f32 %v350_v55  ;;  %v349_v58 = vsub.f32 %v340_v50, %v347_v57  ;;  %2747 = vmatpush3.msra.mxu1 %v441_v56 }
 0x407   :  { %2756 = vmatprep.subr.mxu1 %v3130_v37 }
 0x408   :  { %v352_v59 = vmul.f32 1.442695, %v349_v58 }
 0x409   :  { %v365_v60 = vpop.permute.xlu0 %364  ;;  %v519_v1 = vpop.permute.xlu1 %518 }
 0x40a   :  { %3049 = vpow2.f32 %v352_v59  ;;  %2742 = vmatpush3.msra.mxu0 %v365_v60 }
 0x40b   :  { %2751 = vmatprep.subr.mxu0 %v3130_v37 }
 0x40d   :  { %v597_v2 = vpop.permute.xlu1 %596 }
 0x410   :  { %v3048_v61 = vpop.eup %3047 }
 0x411   :  { %v354_v62 = vsel %vm341_vm3, %v3048_v61, 0.0 }
 0x412   :  { %355 = vadd.xlane.f32.xlu0 %v354_v62 }
 0x414   :  { %v3050_v63 = vpop.eup %3049 }
 0x415   :  { %v357_v0 = vsel %vm341_vm3, %v3050_v63, 0.0 }
 0x416   :  { %358 = vadd.xlane.f32.xlu1 %v357_v0 }
 0x427   :  { %594 = vrot.lane.b32.xlu1 %v3224_v40, %s3135_s14 }
 0x428   :  { %516 = vrot.lane.b32.xlu0 %v3226_v42, %s3135_s14 }
 0x49f   :  { %v356_v3 = vpop.xlane.xlu0 %355 }
 0x4a0   :  { %3051 = vrcp.f32 %v356_v3 }
 0x4a3   :  { %v359_v4 = vpop.xlane.xlu1 %358  ;;  %v517_v9 = vpop.permute.xlu0 %516 }
 0x4a4   :  { %3053 = vrcp.f32 %v359_v4 }
 0x4a7   :  { %v595_v10 = vpop.permute.xlu1 %594 }
 0x4aa   :  { %v3052_v5 = vpop.eup %3051 }
 0x4ab   :  { %v362_v6 = vmul.f32 %v3052_v5, %v3048_v61  ;;  %v2571_v61 = vld [vmem:[%s3518_s2 + $0x1] ss:$0 sm:$0xff] }
 0x4ad   :  { %2744 = vmatmul.mubr.msk.f32.vlgmr.msra.gmra.mrb[2].mxu0 %vm341_vm3, %v362_v6 }
 0x4ae   :  { %v3054_v7 = vpop.eup %3053  ;;  %2752 = vmatpush3.xpose.msk.msra.mxu0 %vm187_vm2, %v519_v1  ;;  %2753 = vmatprep.mubr.msk.f32.mxu0 %vm3131_vm1, %v3130_v37 }
 0x4af   :  { %v363_v8 = vmul.f32 %v3054_v7, %v3050_v63  ;;  %2761 = vmatprep.subr.mxu0 %v3130_v37 }
 0x4b1   :  { %2749 = vmatmul.mubr.msk.f32.vlgmr.msra.gmra.mrb[4].mxu1 %vm341_vm3, %v363_v8  ;;  %2754 = vmatmul.mubr.msk.f32.vlgmr.msra.gmra.mrb[4].mxu0 %vm187_vm2, %v517_v9 }
 0x4b2   :  { %2757 = vmatpush3.xpose.msk.msra.mxu1 %vm187_vm2, %v597_v2  ;;  %2758 = vmatprep.mubr.msk.f32.mxu1 %vm3131_vm1, %v3130_v37 }
 0x4b3   :  { %2766 = vmatprep.subr.mxu1 %v3130_v37  ;;  %2763 = vmatprep.mubr.msk.f32.mxu0 %vm3131_vm1, %v3130_v37 }
 0x4b5   :  { %2759 = vmatmul.mubr.msk.f32.vlgmr.msra.gmra.mrb[6].mxu1 %vm187_vm2, %v595_v10 }
 0x4b6   :  { %2768 = vmatprep.mubr.msk.f32.mxu1 %vm3131_vm1, %v3130_v37 }
 0x580   :  { %v3278_v11 = vpop.f32.mrb[2].mxu0 }
 0x581   :  { %v2745_v12 = vpop.f32.mrb[3].mxu0 }
 0x584   :  { %v3280_v13 = vpop.f32.mrb[4].mxu1  ;;  %v590_v18 = vpop.f32.mrb[4].mxu0 }
 0x585   :  { %v672_v20 = vmul.f32 0.25, %v590_v18  ;;  %v2750_v21 = vpop.f32.mrb[5].mxu1  ;;  %v2755_v22 = vpop.f32.mrb[5].mxu0 }
 0x586   :  { %v81_v22 = vld [vmem:[#allocation2 + $0x28] sm:$0xff] }
 0x587   :  { %v674_v23 = vsel %vm341_vm3, %v672_v20, -inf }
 0x588   :  { %675 = vmax.xlane.f32.xlu0 %v674_v23  ;;  %v668_v24 = vpop.f32.mrb[6].mxu1  ;;  %v82_v23 = vld [vmem:[#allocation2 + $0x38] sm:$0xff] }
 0x589   :  { %v673_v25 = vmul.f32 0.25, %v668_v24  ;;  %v2760_v26 = vpop.f32.mrb[7].mxu1  ;;  %v2942_v24 = vpack.c.bf16 %v82_v23, %v81_v22 }
 0x58b   :  { %v677_v27 = vsel %vm341_vm3, %v673_v25, -inf }
 0x58c   :  { %678 = vmax.xlane.f32.xlu1 %v677_v27 }
 0x59d   :  { %772 = vrot.lane.b32.xlu1 %v3224_v40, %s3136_s15  ;;  %v3028_v40 = vpack.i.bf16 %v3197_v19, %v3191_v16 }
 0x5a1   :  { %3024 = vrot.lane.b32.xlu1 %v3023_v17, %s3137_s16 }
 0x5a5   :  { %3029 = vrot.lane.b32.xlu1 %v3028_v40, %s3137_s16 }
 0x615   :  { %v676_v28 = vpop.xlane.xlu0 %675 }
 0x616   :  { %v680_v29 = vsub.f32 %v672_v20, %v676_v28  ;;  %v80_v20 = vld [vmem:[#allocation2 + $0x18] sm:$0xff] }
 0x618   :  { %v682_v30 = vmul.f32 1.442695, %v680_v29 }
 0x619   :  { %v679_v31 = vpop.xlane.xlu1 %678 }
 0x61a   :  { %3055 = vpow2.f32 %v682_v30  ;;  %v681_v32 = vsub.f32 %v673_v25, %v679_v31 }
 0x61c   :  { %v684_v33 = vmul.f32 1.442695, %v681_v32  ;;  %v2574_v32 = vld [vmem:[%s3518_s2 + $0x2] ss:$0 sm:$0xff] }
 0x61d   :  { %v773_v35 = vpop.permute.xlu1 %772 }
 0x61e   :  { %3057 = vpow2.f32 %v684_v33  ;;  %2767 = vmatpush3.msra.mxu1 %v773_v35  ;;  %v2575_v35 = vld [vmem:[%s3518_s2 + $0x3] ss:$0 sm:$0xff] }
 0x621   :  { %v3025_v14 = vpop.permute.xlu1 %3024 }
 0x622   :  { %v3027_v15 = vunpack.i.h.bf16 %v3025_v14  ;;  %v3026_v17 = vunpack.i.l.bf16 %v3025_v14  ;;  %v87_v14 = vld [vmem:[#allocation2 + $0x80] sm:$0xff] }
 0x624   :  { %v3056_v38 = vpop.eup %3055  ;;  %v2930_v16 = vpack.c.bf16 %v3027_v15, %v3026_v17  ;;  %v88_v15 = vld [vmem:[#allocation2 + $0x90] sm:$0xff] }
 0x625   :  { %v686_v39 = vsel %vm341_vm3, %v3056_v38, 0.0  ;;  %v3030_v19 = vpop.permute.xlu1 %3029  ;;  %v2954_v17 = vpack.c.bf16 %v88_v15, %v87_v14 }
 0x626   :  { %687 = vadd.xlane.f32.xlu0 %v686_v39  ;;  %v3032_v50 = vunpack.i.h.bf16 %v3030_v19  ;;  %v3031_v51 = vunpack.i.l.bf16 %v3030_v19  ;;  %v90_v19 = vld [vmem:[#allocation2 + $0xb0] sm:$0xff] }
 0x628   :  { %v3058_v41 = vpop.eup %3057  ;;  %v2934_v52 = vpack.c.bf16 %v3032_v50, %v3031_v51  ;;  %v2576_v51 = vld [vmem:[%s3518_s2 + $0x4] ss:$0 sm:$0xff] }
 0x629   :  { %v689_v43 = vsel %vm341_vm3, %v3058_v41, 0.0 }
 0x62a   :  { %690 = vadd.xlane.f32.xlu0 %v689_v43 }
 0x640   :  { %696 = vrot.lane.b32.xlu0 %v3226_v42, %s3136_s15 }
 0x6b3   :  { %v688_v44 = vpop.xlane.xlu0 %687 }
 0x6b4   :  { %3059 = vrcp.f32 %v688_v44 }
 0x6b7   :  { %v691_v45 = vpop.xlane.xlu0 %690 }
 0x6b8   :  { %3061 = vrcp.f32 %v691_v45  ;;  %v83_v45 = vld [vmem:[#allocation2 + $0x40] sm:$0xff] }
 0x6bb   :  { %v697_v46 = vpop.permute.xlu0 %696 }
 0x6bc   :  { %2762 = vmatpush3.msra.mxu0 %v697_v46  ;;  %v84_v46 = vld [vmem:[#allocation2 + $0x50] sm:$0xff] }
 0x6bd   :  { %2931 = vmatprep.subr.bf16.mxu0 %v2930_v16 }
 0x6be   :  { %v3060_v47 = vpop.eup %3059 }
 0x6bf   :  { %v694_v48 = vmul.f32 %v3060_v47, %v3056_v38  ;;  %v2946_v47 = vpack.c.bf16 %v84_v46, %v83_v45 }
 0x6c1   :  { %2764 = vmatmul.mubr.msk.f32.vlgmr.msra.gmra.mrb[6].mxu0 %vm341_vm3, %v694_v48  ;;  %v85_v48 = vld [vmem:[#allocation2 + $0x60] sm:$0xff] }
 0x6c2   :  { %v3062_v42 = vpop.eup %3061  ;;  %2933 = vmatpush3.bf16.msra.mxu0 %v2930_v16  ;;  %v89_v16 = vld [vmem:[#allocation2 + $0xa0] sm:$0xff] }
 0x6c3   :  { %v695_v49 = vmul.f32 %v3062_v42, %v3058_v41  ;;  %2935 = vmatprep.subr.bf16.mxu0 %v2934_v52  ;;  %v86_v42 = vld [vmem:[#allocation2 + $0x70] sm:$0xff]  ;;  %v2958_v50 = vpack.c.bf16 %v90_v19, %v89_v16 }
 0x6c5   :  { %2769 = vmatmul.mubr.msk.f32.vlgmr.msra.gmra.mrb[8].mxu1 %vm341_vm3, %v695_v49  ;;  %v2950_v49 = vpack.c.bf16 %v86_v42, %v85_v48  ;;  %v2582_v42 = vld [vmem:[%s3518_s2 + $0x6] ss:$0 sm:$0xff] }
 0x6c6   :  { %2937 = vmatpush3.bf16.msra.mxu0 %v2934_v52 }
 0x6c7   :  { %2947 = vmatprep.subr.bf16.mxu0 %v2946_v47 }
 0x794   :  { %v768_v53 = vpop.f32.mrb[6].mxu0 }
 0x795   :  { %850 = vrot.lane.b32.xlu0 %v768_v53, %s3129_s26  ;;  %v2765_v54 = vpop.f32.mrb[7].mxu0 }
 0x798   :  { %v844_v55 = vpop.f32.mrb[8].mxu1 }
 0x799   :  { %852 = vrot.lane.b32.xlu1 %v844_v55, %s3129_s26  ;;  %v2770_v56 = vpop.f32.mrb[9].mxu1 }
 0x807   :  { %v851_v57 = vpop.permute.xlu0 %850 }
 0x808   :  { %v856_v58 = vsel %vm187_vm2, %v3278_v11, %v851_v57 }
 0x809   :  { %2779 = vmatprep.mubr.msk.f32.mxu0 %vm35_vm0, %v856_v58 }
 0x80b   :  { %v853_v59 = vpop.permute.xlu1 %852 }
 0x80c   :  { %v857_v60 = vsel %vm187_vm2, %v3280_v13, %v853_v59 }
 0x80d   :  { %2780 = vmatmul.mubr.msk.f32.vlgmr.msra.gmra.mrb[8].mxu0 %vm35_vm0, %v857_v60 }
 0x80e   :  { %2949 = vmatpush3.bf16.msra.mxu0 %v2946_v47 }
 0x80f   :  { %2951 = vmatprep.subr.bf16.mxu0 %v2950_v49 }
 0x812   :  { %2953 = vmatpush3.bf16.msra.mxu0 %v2950_v49 }
 0x813   :  { %2955 = vmatprep.subr.bf16.mxu0 %v2954_v17 }
 0x816   :  { %2957 = vmatpush3.bf16.msra.mxu0 %v2954_v17  ;;  %v2583_v17 = vld [vmem:[%s3518_s2 + $0x7] ss:$0 sm:$0xff] }
 0x817   :  { %2959 = vmatprep.subr.bf16.mxu0 %v2958_v50 }
 0x81a   :  { %2961 = vmatpush3.bf16.msra.mxu0 %v2958_v50 }
 0x81b   :  { %2833 = vmatprep.subr.mxu0 %v3130_v37 }
 0x8e0   :  { %v2781_v62 = vpop.f32.mrb[8].mxu0 }
 0x8e1   :  { %v956_v63 = vadd.f32 %v2781_v62, %v2571_v61  ;;  %v950_v0 = vpop.f32.mrb[9].mxu0 }
 0x8e2   :  { %v951_v1 = vadd.f32 %v2571_v61, %v950_v0 }
 0x8e3   :  { %v960_v2 = vadd.f32 %v956_v63, %v3211_v36 }
 0x8e4   :  { %v959_v3 = vadd.f32 %v951_v1, %v3207_v34  ;;  %v79_v34 = vld [vmem:[#allocation2 + $0x8] sm:$0xff] }
 0x8e5   :  { %v964_v4 = vsel %vm35_vm0, %v960_v2, 0.0  ;;  %v2938_v21 = vpack.c.bf16 %v80_v20, %v79_v34 }
 0x8e6   :  { %965 = vadd.xlane.f32.xlu1 %v964_v4  ;;  %v961_v5 = vsel %vm35_vm0, %v959_v3, 0.0 }
 0x8e7   :  { %962 = vadd.xlane.f32.xlu0 %v961_v5  ;;  %2939 = vmatprep.subr.bf16.mxu1 %v2938_v21 }
 0x8e8   :  { %2941 = vmatpush3.bf16.msra.mxu1 %v2938_v21 }
 0x8e9   :  { %2943 = vmatprep.subr.bf16.mxu1 %v2942_v24 }
 0x8ec   :  { %2945 = vmatpush3.bf16.msra.mxu1 %v2942_v24 }
 0x973   :  { %v966_v6 = vpop.xlane.xlu1 %965 }
 0x974   :  { %v968_v7 = vmul.f32 0.03125, %v966_v6  ;;  %v963_v8 = vpop.xlane.xlu0 %962 }
 0x975   :  { %v967_v9 = vmul.f32 0.03125, %v963_v8 }
 0x976   :  { %v970_v10 = vsub.f32 %v960_v2, %v968_v7 }
 0x977   :  { %v969_v11 = vsub.f32 %v959_v3, %v967_v9 }
 0x978   :  { %v972_v18 = vmul.f32 %v970_v10, %v970_v10 }
 0x979   :  { %v971_v12 = vmul.f32 %v969_v11, %v969_v11 }
 0x97a   :  { %v976_v36 = vsel %vm35_vm0, %v972_v18, 0.0 }
 0x97b   :  { %v973_v13 = vsel %vm35_vm0, %v971_v12, 0.0 }
 0x97c   :  { %974 = vadd.xlane.f32.xlu0 %v973_v13 }
 0x980   :  { %977 = vadd.xlane.f32.xlu0 %v976_v36 }
 0xa09   :  { %v975_v25 = vpop.xlane.xlu0 %974 }
 0xa0a   :  { %v979_v26 = vmul.f32 0.03125, %v975_v25 }
 0xa0c   :  { %v981_v27 = vadd.f32 1e-12, %v979_v26 }
 0xa0d   :  { %v978_v28 = vpop.xlane.xlu0 %977 }
 0xa0e   :  { %3063 = vrsqrt.f32 %v981_v27  ;;  %v980_v29 = vmul.f32 0.03125, %v978_v28 }
 0xa10   :  { %v982_v30 = vadd.f32 1e-12, %v980_v29 }
 0xa12   :  { %3065 = vrsqrt.f32 %v982_v30 }
 0xa18   :  { %v3064_v31 = vpop.eup %3063 }
 0xa19   :  { %v985_v33 = vmul.f32 %v3064_v31, %v969_v11 }
 0xa1b   :  { %v991_v38 = vmul.f32 %v2574_v32, %v985_v33  ;;  %v3341_v33 = vld [vmem:[#allocation2 + $0xd0] sm:$0xff] }
 0xa1c   :  { %v3066_v39 = vpop.eup %3065 }
 0xa1d   :  { %v986_v41 = vmul.f32 %v3066_v39, %v970_v10  ;;  %v997_v43 = vadd.f32 %v2575_v35, %v991_v38  ;;  %v2579_v10 = vld [vmem:[%s3518_s2 + $0x5] ss:$0 sm:$0xff]  ;;  %v3347_v39 = vld [vmem:[#allocation2 + $0xf0] sm:$0xff] }
 0xa1e   :  { %v3345_v38 = vld [vmem:[#allocation2 + $0xe0] sm:$0xff] }
 0xa1f   :  { %v992_v40 = vmul.f32 %v2574_v32, %v986_v41  ;;  %2790 = vmatprep.mubr.msk.f32.mxu1 %vm35_vm0, %v997_v43  ;;  %v3339_v32 = vld [vmem:[#allocation2 + $0xc0] sm:$0xff]  ;;  %v2966_v41 = vpack.c.bf16 %v3347_v39, %v3345_v38 }
 0xa21   :  { %v998_v44 = vadd.f32 %v2575_v35, %v992_v40  ;;  %v2962_v35 = vpack.c.bf16 %v3341_v33, %v3339_v32 }
 0xa23   :  { %2791 = vmatmul.mubr.msk.f32.vlgmr.msra.gmra.mrb[10].mxu1 %vm35_vm0, %v998_v44  ;;  %2963 = vmatprep.subr.bf16.mxu1 %v2962_v35 }
 0xa24   :  { %2965 = vmatpush3.bf16.msra.mxu1 %v2962_v35 }
 0xa25   :  { %2967 = vmatprep.subr.bf16.mxu1 %v2966_v41 }
 0xa28   :  { %2969 = vmatpush3.bf16.msra.mxu1 %v2966_v41 }
 0xa29   :  { %2823 = vmatprep.subr.mxu1 %v3130_v37 }
 0xaf6   :  { %v2792_v52 = vpop.f32.mrb[10].mxu1 }
 0xaf7   :  { %v1081_v53 = vadd.f32 %v2792_v52, %v2576_v51  ;;  %v1075_v54 = vpop.f32.mrb[11].mxu1  ;;  %v2592_v52 = vld [vmem:[%s3518_s2 + $0x8] ss:$0 sm:$0xff] }
 0xaf8   :  { %v1076_v55 = vadd.f32 %v2576_v51, %v1075_v54 }
 0xaf9   :  { %v1085_v56 = vmul.f32 %v1081_v53, %v1081_v53 }
 0xafa   :  { %v1084_v57 = vmul.f32 %v1076_v55, %v1076_v55 }
 0xafb   :  { %v1087_v58 = vmul.f32 %v1085_v56, %v1081_v53 }
 0xafc   :  { %v1086_v59 = vmul.f32 %v1084_v57, %v1076_v55 }
 0xafd   :  { %v1089_v60 = vmul.f32 0.044715, %v1087_v58 }
 0xafe   :  { %v1088_v61 = vmul.f32 0.044715, %v1086_v59 }
 0xaff   :  { %v1091_v62 = vadd.f32 %v1089_v60, %v1081_v53 }
 0xb00   :  { %v1090_v63 = vadd.f32 %v1088_v61, %v1076_v55 }
 0xb01   :  { %v1093_v0 = vmul.f32 0.7978846, %v1091_v62 }
 0xb02   :  { %v1092_v1 = vmul.f32 0.7978846, %v1090_v63 }
 0xb03   :  { %3067 = vtanh.f32 %v1093_v0 }
 0xb04   :  { %3069 = vtanh.f32 %v1092_v1 }
 0xb0d   :  { %v3068_v2 = vpop.eup %3067 }
 0xb0e   :  { %v3070_v3 = vpop.eup %3069  ;;  %v1097_v4 = vadd.f32 1.0, %v3068_v2 }
 0xb0f   :  { %v1096_v5 = vadd.f32 1.0, %v3070_v3 }
 0xb10   :  { %v1099_v6 = vmul.f32 0.5, %v1097_v4 }
 0xb11   :  { %v1098_v7 = vmul.f32 0.5, %v1096_v5 }
 0xb12   :  { %v1101_v9 = vmul.f32 %v1099_v6, %v1081_v53 }
 0xb13   :  { %v1100_v8 = vmul.f32 %v1098_v7, %v1076_v55 }
 0xb15   :  { %2809 = vmatprep.mubr.msk.f32.mxu0 %vm1106_vm4, %v1100_v8 }
 0xb16   :  { %2810 = vmatmul.mubr.msk.f32.vlgmr.msra.gmra.mrb[10].mxu0 %vm1106_vm4, %v1101_v9 }
 0xb17   :  { %2835 = vmatprep.mubr.msk.f32.mxu0 %vm3131_vm1, %v3130_v37 }
 0xbe9   :  { %v2811_v11 = vpop.f32.mrb[10].mxu0 }
 0xbea   :  { %v1185_v12 = vadd.f32 %v2811_v11, %v2579_v10  ;;  %v1179_v13 = vpop.f32.mrb[11].mxu0 }
 0xbeb   :  { %v1180_v18 = vadd.f32 %v2579_v10, %v1179_v13 }
 0xbec   :  { %v1189_v36 = vadd.f32 %v1185_v12, %v998_v44 }
 0xbed   :  { %v1188_v34 = vadd.f32 %v1180_v18, %v997_v43 }
 0xbee   :  { %v1193_v20 = vsel %vm35_vm0, %v1189_v36, 0.0 }
 0xbef   :  { %1194 = vadd.xlane.f32.xlu1 %v1193_v20  ;;  %v1190_v21 = vsel %vm35_vm0, %v1188_v34, 0.0 }
 0xbf0   :  { %1191 = vadd.xlane.f32.xlu0 %v1190_v21 }
 0xc7c   :  { %v1195_v22 = vpop.xlane.xlu1 %1194 }
 0xc7d   :  { %v1197_v23 = vmul.f32 0.03125, %v1195_v22  ;;  %v1192_v24 = vpop.xlane.xlu0 %1191 }
 0xc7e   :  { %v1196_v25 = vmul.f32 0.03125, %v1192_v24 }
 0xc7f   :  { %v1199_v26 = vsub.f32 %v1189_v36, %v1197_v23 }
 0xc80   :  { %v1198_v27 = vsub.f32 %v1188_v34, %v1196_v25 }
 0xc81   :  { %v1201_v28 = vmul.f32 %v1199_v26, %v1199_v26 }
 0xc82   :  { %v1200_v29 = vmul.f32 %v1198_v27, %v1198_v27 }
 0xc83   :  { %v1205_v30 = vsel %vm35_vm0, %v1201_v28, 0.0 }
 0xc84   :  { %1206 = vadd.xlane.f32.xlu1 %v1205_v30  ;;  %v1202_v31 = vsel %vm35_vm0, %v1200_v29, 0.0 }
 0xc85   :  { %1203 = vadd.xlane.f32.xlu0 %v1202_v31 }
 0xd11   :  { %v1207_v43 = vpop.xlane.xlu1 %1206 }
 0xd12   :  { %v1209_v40 = vmul.f32 0.03125, %v1207_v43  ;;  %v1204_v44 = vpop.xlane.xlu0 %1203 }
 0xd13   :  { %v1208_v45 = vmul.f32 0.03125, %v1204_v44 }
 0xd14   :  { %v1211_v46 = vadd.f32 1e-12, %v1209_v40 }
 0xd15   :  { %v1210_v47 = vadd.f32 1e-12, %v1208_v45 }
 0xd16   :  { %3071 = vrsqrt.f32 %v1211_v46 }
 0xd17   :  { %3073 = vrsqrt.f32 %v1210_v47 }
 0xd20   :  { %v3072_v48 = vpop.eup %3071 }
 0xd21   :  { %v3074_v49 = vpop.eup %3073  ;;  %v1215_v14 = vmul.f32 %v3072_v48, %v1199_v26 }
 0xd22   :  { %v1214_v15 = vmul.f32 %v3074_v49, %v1198_v27 }
 0xd23   :  { %v1221_v16 = vmul.f32 %v2582_v42, %v1215_v14 }
 0xd24   :  { %v1220_v19 = vmul.f32 %v2582_v42, %v1214_v15 }
 0xd25   :  { %v3360_v51 = vadd.f32 %v2583_v17, %v1221_v16 }
 0xd26   :  { %v3358_v50 = vadd.f32 %v2583_v17, %v1220_v19 }
 0xd28   :  { %2820 = vmatprep.mubr.msk.f32.mxu1 %vm35_vm0, %v3358_v50 }
 0xd29   :  { %2821 = vmatmul.mubr.msk.f32.vlgmr.msra.gmra.mrb[12].mxu1 %vm35_vm0, %v3360_v51 }
 0xd2a   :  { %2825 = vmatprep.mubr.msk.f32.mxu1 %vm3131_vm1, %v3130_v37 }
 0xdfc   :  { %v2822_v53 = vpop.f32.mrb[12].mxu1 }
 0xdfd   :  { %v3371_v54 = vadd.f32 %v2822_v53, %v2592_v52  ;;  %v1330_v55 = vpop.f32.mrb[13].mxu1 }
 0xdfe   :  { %v3373_v56 = vadd.f32 %v2592_v52, %v1330_v55 }
 0xdff   :  { %1417 = vrot.lane.b32.xlu1 %v3371_v54, %s3132_s11 }
 0xe00   :  { %1340 = vrot.lane.b32.xlu0 %v3373_v56, %s3132_s11 }
 0xe71   :  { %v1418_v58 = vpop.permute.xlu1 %1417 }
 0xe72   :  { %v1341_v57 = vpop.permute.xlu0 %1340 }
 0xe73   :  { %2824 = vmatpush3.xpose.msk.msra.mxu1 %vm187_vm2, %v1341_v57  ;;  %v3038_v57 = vpack.i.bf16 %v3347_v39, %v3345_v38 }
 0xe74   :  { %2828 = vmatprep.subr.mxu1 %v3130_v37 }
 0xe76   :  { %2826 = vmatmul.mubr.msk.f32.vlgmr.msra.gmra.mrb[14].mxu1 %vm187_vm2, %v3373_v56 }
 0xe77   :  { %2829 = vmatpush3.xpose.msk.msra.mxu1 %vm187_vm2, %v1418_v58  ;;  %2830 = vmatprep.mubr.msk.f32.mxu1 %vm3131_vm1, %v3130_v37 }
 0xe78   :  { %2838 = vmatprep.subr.mxu1 %v3130_v37 }
 0xe7a   :  { %2831 = vmatmul.mubr.msk.f32.vlgmr.msra.gmra.mrb[16].mxu1 %vm187_vm2, %v3371_v54 }
 0xe7b   :  { %2840 = vmatprep.mubr.msk.f32.mxu1 %vm3131_vm1, %v3130_v37 }
 0xf49   :  { %v1412_v59 = vpop.f32.mrb[14].mxu1 }
 0xf4a   :  { %v1493_v60 = vmul.f32 0.25, %v1412_v59  ;;  %v2827_v61 = vpop.f32.mrb[15].mxu1 }
 0xf4c   :  { %v1495_v62 = vsel %vm341_vm3, %v1493_v60, -inf }
 0xf4d   :  { %1496 = vmax.xlane.f32.xlu1 %v1495_v62  ;;  %v1489_v63 = vpop.f32.mrb[16].mxu1 }
 0xf4e   :  { %v1494_v0 = vmul.f32 0.25, %v1489_v63  ;;  %v2832_v1 = vpop.f32.mrb[17].mxu1 }
 0xf50   :  { %v1498_v2 = vsel %vm341_vm3, %v1494_v0, -inf }
 0xf51   :  { %1499 = vmax.xlane.f32.xlu0 %v1498_v2 }
 0xf5e   :  { %1593 = vrot.lane.b32.xlu1 %v3371_v54, %s3133_s12 }
 0xf62   :  { %1671 = vrot.lane.b32.xlu1 %v3373_v56, %s3134_s13 }
 0xf66   :  { %1749 = vrot.lane.b32.xlu1 %v3371_v54, %s3134_s13 }
 0xf67   :  { %1517 = vrot.lane.b32.xlu0 %v3373_v56, %s3133_s12 }
 0xfda   :  { %v1497_v3 = vpop.xlane.xlu1 %1496 }
 0xfdb   :  { %v1501_v4 = vsub.f32 %v1493_v60, %v1497_v3 }
 0xfdd   :  { %v1503_v5 = vmul.f32 1.442695, %v1501_v4 }
 0xfde   :  { %v1594_v6 = vpop.permute.xlu1 %1593  ;;  %v1500_v7 = vpop.xlane.xlu0 %1499 }
 0xfdf   :  { %3075 = vpow2.f32 %v1503_v5  ;;  %v1502_v8 = vsub.f32 %v1494_v0, %v1500_v7  ;;  %2839 = vmatpush3.msra.mxu1 %v1594_v6 }
 0xfe0   :  { %2848 = vmatprep.subr.mxu1 %v3130_v37 }
 0xfe1   :  { %v1505_v9 = vmul.f32 1.442695, %v1502_v8 }
 0xfe2   :  { %v1518_v10 = vpop.permute.xlu0 %1517  ;;  %v1672_v36 = vpop.permute.xlu1 %1671 }
 0xfe3   :  { %3077 = vpow2.f32 %v1505_v9  ;;  %2834 = vmatpush3.msra.mxu0 %v1518_v10 }
 0xfe4   :  { %2843 = vmatprep.subr.mxu0 %v3130_v37 }
 0xfe6   :  { %v1750_v34 = vpop.permute.xlu1 %1749 }
 0xfe9   :  { %v3076_v11 = vpop.eup %3075 }
 0xfea   :  { %v1507_v12 = vsel %vm341_vm3, %v3076_v11, 0.0 }
 0xfeb   :  { %1508 = vadd.xlane.f32.xlu0 %v1507_v12  ;;  %v2607_v12 = vld [vmem:[%s3518_s2 + $0x9] ss:$0 sm:$0xff] }
 0xfed   :  { %v3078_v13 = vpop.eup %3077 }
 0xfee   :  { %v1510_v18 = vsel %vm341_vm3, %v3078_v13, 0.0 }
 0xfef   :  { %1511 = vadd.xlane.f32.xlu1 %v1510_v18 }
0x1000   :  { %1747 = vrot.lane.b32.xlu1 %v3371_v54, %s3135_s14 }
0x1001   :  { %1669 = vrot.lane.b32.xlu0 %v3373_v56, %s3135_s14 }
0x1078   :  { %v1509_v20 = vpop.xlane.xlu0 %1508 }
0x1079   :  { %3079 = vrcp.f32 %v1509_v20 }
0x107c   :  { %v1512_v21 = vpop.xlane.xlu1 %1511  ;;  %v1670_v26 = vpop.permute.xlu0 %1669 }
0x107d   :  { %3081 = vrcp.f32 %v1512_v21 }
0x1080   :  { %v1748_v27 = vpop.permute.xlu1 %1747 }
0x1083   :  { %v3080_v22 = vpop.eup %3079 }
0x1084   :  { %v1515_v23 = vmul.f32 %v3080_v22, %v3076_v11 }
0x1086   :  { %2836 = vmatmul.mubr.msk.f32.vlgmr.msra.gmra.mrb[12].mxu0 %vm341_vm3, %v1515_v23 }
0x1087   :  { %v3082_v24 = vpop.eup %3081  ;;  %2844 = vmatpush3.xpose.msk.msra.mxu0 %vm187_vm2, %v1672_v36  ;;  %2845 = vmatprep.mubr.msk.f32.mxu0 %vm3131_vm1, %v3130_v37 }
0x1088   :  { %v1516_v25 = vmul.f32 %v3082_v24, %v3078_v13  ;;  %2853 = vmatprep.subr.mxu0 %v3130_v37 }
0x108a   :  { %2841 = vmatmul.mubr.msk.f32.vlgmr.msra.gmra.mrb[18].mxu1 %vm341_vm3, %v1516_v25  ;;  %2846 = vmatmul.mubr.msk.f32.vlgmr.msra.gmra.mrb[14].mxu0 %vm187_vm2, %v1670_v26 }
0x108b   :  { %2849 = vmatpush3.xpose.msk.msra.mxu1 %vm187_vm2, %v1750_v34  ;;  %2850 = vmatprep.mubr.msk.f32.mxu1 %vm3131_vm1, %v3130_v37 }
0x108c   :  { %2858 = vmatprep.subr.mxu1 %v3130_v37  ;;  %2855 = vmatprep.mubr.msk.f32.mxu0 %vm3131_vm1, %v3130_v37 }
0x108e   :  { %2851 = vmatmul.mubr.msk.f32.vlgmr.msra.gmra.mrb[20].mxu1 %vm187_vm2, %v1748_v27 }
0x108f   :  { %2860 = vmatprep.mubr.msk.f32.mxu1 %vm3131_vm1, %v3130_v37 }
0x1159   :  { %v3425_v28 = vpop.f32.mrb[12].mxu0 }
0x115a   :  { %v2837_v29 = vpop.f32.mrb[13].mxu0 }
0x115d   :  { %v3427_v30 = vpop.f32.mrb[18].mxu1  ;;  %v1743_v31 = vpop.f32.mrb[14].mxu0 }
0x115e   :  { %v1825_v35 = vmul.f32 0.25, %v1743_v31  ;;  %v2842_v41 = vpop.f32.mrb[19].mxu1  ;;  %v2847_v43 = vpop.f32.mrb[15].mxu0 }
0x115f   :  { %v1234_v41 = vld [vmem:[#allocation2 + $0xd8] sm:$0xff] }
0x1160   :  { %v1827_v40 = vsel %vm341_vm3, %v1825_v35, -inf }
0x1161   :  { %1828 = vmax.xlane.f32.xlu0 %v1827_v40  ;;  %v1821_v44 = vpop.f32.mrb[20].mxu1  ;;  %v1235_v40 = vld [vmem:[#allocation2 + $0xe8] sm:$0xff] }
0x1162   :  { %v1826_v45 = vmul.f32 0.25, %v1821_v44  ;;  %v2852_v46 = vpop.f32.mrb[21].mxu1  ;;  %v1236_v44 = vld [vmem:[#allocation2 + $0xf8] sm:$0xff] }
0x1164   :  { %v1830_v47 = vsel %vm341_vm3, %v1826_v45, -inf }
0x1165   :  { %1831 = vmax.xlane.f32.xlu1 %v1830_v47 }
0x1176   :  { %1925 = vrot.lane.b32.xlu1 %v3371_v54, %s3136_s15  ;;  %v3033_v54 = vpack.i.bf16 %v3341_v33, %v3339_v32 }
0x117a   :  { %3034 = vrot.lane.b32.xlu1 %v3033_v54, %s3137_s16 }
0x117e   :  { %3039 = vrot.lane.b32.xlu1 %v3038_v57, %s3137_s16 }
0x11ee   :  { %v1829_v48 = vpop.xlane.xlu0 %1828 }
0x11ef   :  { %v1833_v42 = vsub.f32 %v1825_v35, %v1829_v48 }
0x11f1   :  { %v1835_v49 = vmul.f32 1.442695, %v1833_v42 }
0x11f2   :  { %v1832_v14 = vpop.xlane.xlu1 %1831 }
0x11f3   :  { %3083 = vpow2.f32 %v1835_v49  ;;  %v1834_v15 = vsub.f32 %v1826_v45, %v1832_v14  ;;  %v2982_v45 = vpack.c.bf16 %v1236_v44, %v1235_v40 }
0x11f5   :  { %v1837_v17 = vmul.f32 1.442695, %v1834_v15 }
0x11f6   :  { %v1926_v16 = vpop.permute.xlu1 %1925 }
0x11f7   :  { %3085 = vpow2.f32 %v1837_v17  ;;  %2859 = vmatpush3.msra.mxu1 %v1926_v16  ;;  %v2610_v17 = vld [vmem:[%s3518_s2 + $0xa] ss:$0 sm:$0xff] }
0x11fa   :  { %v3035_v32 = vpop.permute.xlu1 %3034 }
0x11fb   :  { %v3037_v33 = vunpack.i.h.bf16 %v3035_v32  ;;  %v3036_v0 = vunpack.i.l.bf16 %v3035_v32  ;;  %v1241_v32 = vld [vmem:[#allocation2 + $0x140] sm:$0xff] }
0x11fd   :  { %v3084_v19 = vpop.eup %3083  ;;  %v2970_v38 = vpack.c.bf16 %v3037_v33, %v3036_v0  ;;  %v1242_v33 = vld [vmem:[#allocation2 + $0x150] sm:$0xff] }
0x11fe   :  { %v1839_v52 = vsel %vm341_vm3, %v3084_v19, 0.0  ;;  %v3040_v39 = vpop.permute.xlu1 %3039  ;;  %v2994_v0 = vpack.c.bf16 %v1242_v33, %v1241_v32 }
0x11ff   :  { %1840 = vadd.xlane.f32.xlu0 %v1839_v52  ;;  %v3042_v1 = vunpack.i.h.bf16 %v3040_v39  ;;  %v3041_v2 = vunpack.i.l.bf16 %v3040_v39  ;;  %v1244_v39 = vld [vmem:[#allocation2 + $0x170] sm:$0xff] }
0x1201   :  { %v3086_v53 = vpop.eup %3085  ;;  %v2974_v3 = vpack.c.bf16 %v3042_v1, %v3041_v2  ;;  %v2612_v2 = vld [vmem:[%s3518_s2 + $0xc] ss:$0 sm:$0xff] }
0x1202   :  { %v1842_v55 = vsel %vm341_vm3, %v3086_v53, 0.0 }
0x1203   :  { %1843 = vadd.xlane.f32.xlu0 %v1842_v55 }
0x1219   :  { %1849 = vrot.lane.b32.xlu0 %v3373_v56, %s3136_s15 }
0x128c   :  { %v1841_v58 = vpop.xlane.xlu0 %1840 }
0x128d   :  { %3087 = vrcp.f32 %v1841_v58 }
0x1290   :  { %v1844_v59 = vpop.xlane.xlu0 %1843 }
0x1291   :  { %3089 = vrcp.f32 %v1844_v59  ;;  %v1237_v59 = vld [vmem:[#allocation2 + $0x100] sm:$0xff] }
0x1294   :  { %v1850_v60 = vpop.permute.xlu0 %1849 }
0x1295   :  { %2854 = vmatpush3.msra.mxu0 %v1850_v60  ;;  %v1238_v60 = vld [vmem:[#allocation2 + $0x110] sm:$0xff] }
0x1296   :  { %2971 = vmatprep.subr.bf16.mxu0 %v2970_v38 }
0x1297   :  { %v3088_v61 = vpop.eup %3087 }
0x1298   :  { %v1847_v62 = vmul.f32 %v3088_v61, %v3084_v19  ;;  %v2611_v19 = vld [vmem:[%s3518_s2 + $0xb] ss:$0 sm:$0xff]  ;;  %v2986_v61 = vpack.c.bf16 %v1238_v60, %v1237_v59 }
0x129a   :  { %2856 = vmatmul.mubr.msk.f32.vlgmr.msra.gmra.mrb[16].mxu0 %vm341_vm3, %v1847_v62  ;;  %v1239_v62 = vld [vmem:[#allocation2 + $0x120] sm:$0xff] }
0x129b   :  { %v3090_v56 = vpop.eup %3089  ;;  %2973 = vmatpush3.bf16.msra.mxu0 %v2970_v38  ;;  %v1243_v38 = vld [vmem:[#allocation2 + $0x160] sm:$0xff] }
0x129c   :  { %v1848_v63 = vmul.f32 %v3090_v56, %v3086_v53  ;;  %2975 = vmatprep.subr.bf16.mxu0 %v2974_v3  ;;  %v1240_v56 = vld [vmem:[#allocation2 + $0x130] sm:$0xff]  ;;  %v2998_v1 = vpack.c.bf16 %v1244_v39, %v1243_v38  ;;  %v2455_v38 = vld [vmem:[%s3519_s3 + $0x8] sm:$0xff] }
0x129e   :  { %2861 = vmatmul.mubr.msk.f32.vlgmr.msra.gmra.mrb[22].mxu1 %vm341_vm3, %v1848_v63  ;;  %v2990_v63 = vpack.c.bf16 %v1240_v56, %v1239_v62  ;;  %v2619_v62 = vld [vmem:[%s3518_s2 + $0xf] ss:$0 sm:$0xff] }
0x129f   :  { %2977 = vmatpush3.bf16.msra.mxu0 %v2974_v3 }
0x12a0   :  { %2987 = vmatprep.subr.bf16.mxu0 %v2986_v61 }
0x136d   :  { %v1921_v4 = vpop.f32.mrb[16].mxu0 }
0x136e   :  { %2003 = vrot.lane.b32.xlu0 %v1921_v4, %s3129_s26  ;;  %v2857_v5 = vpop.f32.mrb[17].mxu0 }
0x1371   :  { %v1997_v6 = vpop.f32.mrb[22].mxu1 }
0x1372   :  { %2005 = vrot.lane.b32.xlu1 %v1997_v6, %s3129_s26  ;;  %v2862_v7 = vpop.f32.mrb[23].mxu1 }
0x13e0   :  { %v2004_v8 = vpop.permute.xlu0 %2003 }
0x13e1   :  { %v2009_v9 = vsel %vm187_vm2, %v3425_v28, %v2004_v8 }
0x13e2   :  { %2871 = vmatprep.mubr.msk.f32.mxu0 %vm35_vm0, %v2009_v9 }
0x13e4   :  { %v2006_v10 = vpop.permute.xlu1 %2005 }
0x13e5   :  { %v2010_v11 = vsel %vm187_vm2, %v3427_v30, %v2006_v10 }
0x13e6   :  { %2872 = vmatmul.mubr.msk.f32.vlgmr.msra.gmra.mrb[18].mxu0 %vm35_vm0, %v2010_v11 }
0x13e7   :  { %2989 = vmatpush3.bf16.msra.mxu0 %v2986_v61 }
0x13e8   :  { %2991 = vmatprep.subr.bf16.mxu0 %v2990_v63 }
0x13eb   :  { %2993 = vmatpush3.bf16.msra.mxu0 %v2990_v63 }
0x13ec   :  { %2995 = vmatprep.subr.bf16.mxu0 %v2994_v0 }
0x13ef   :  { %2997 = vmatpush3.bf16.msra.mxu0 %v2994_v0  ;;  %v2454_v0 = vld [vmem:[%s3519_s3] sm:$0xff] }
0x13f0   :  { %2999 = vmatprep.subr.bf16.mxu0 %v2998_v1 }
0x13f3   :  { %3001 = vmatpush3.bf16.msra.mxu0 %v2998_v1  ;;  %v2380_v1 = vld [vmem:[%s3519_s3 + $0x20] sm:$0x3] }
0x14b9   :  { %v2873_v13 = vpop.f32.mrb[18].mxu0 }
0x14ba   :  { %v2109_v18 = vadd.f32 %v2873_v13, %v2607_v12  ;;  %v2103_v36 = vpop.f32.mrb[19].mxu0 }
0x14bb   :  { %v2104_v34 = vadd.f32 %v2607_v12, %v2103_v36 }
0x14bc   :  { %v2113_v20 = vadd.f32 %v2109_v18, %v3360_v51 }
0x14bd   :  { %v2112_v21 = vadd.f32 %v2104_v34, %v3358_v50  ;;  %v1233_v50 = vld [vmem:[#allocation2 + $0xc8] sm:$0xff] }
0x14be   :  { %v2117_v22 = vsel %vm35_vm0, %v2113_v20, 0.0  ;;  %v2978_v43 = vpack.c.bf16 %v1234_v41, %v1233_v50 }
0x14bf   :  { %2118 = vadd.xlane.f32.xlu1 %v2117_v22  ;;  %v2114_v23 = vsel %vm35_vm0, %v2112_v21, 0.0 }
0x14c0   :  { %2115 = vadd.xlane.f32.xlu0 %v2114_v23  ;;  %2979 = vmatprep.subr.bf16.mxu1 %v2978_v43 }
0x14c1   :  { %2981 = vmatpush3.bf16.msra.mxu1 %v2978_v43 }
0x14c2   :  { %2983 = vmatprep.subr.bf16.mxu1 %v2982_v45 }
0x14c5   :  { %2985 = vmatpush3.bf16.msra.mxu1 %v2982_v45 }
0x154c   :  { %v2119_v24 = vpop.xlane.xlu1 %2118 }
0x154d   :  { %v2121_v25 = vmul.f32 0.03125, %v2119_v24  ;;  %v2116_v26 = vpop.xlane.xlu0 %2115 }
0x154e   :  { %v2120_v27 = vmul.f32 0.03125, %v2116_v26 }
0x154f   :  { %v2123_v28 = vsub.f32 %v2113_v20, %v2121_v25 }
0x1550   :  { %v2122_v29 = vsub.f32 %v2112_v21, %v2120_v27 }
0x1551   :  { %v2125_v35 = vmul.f32 %v2123_v28, %v2123_v28 }
0x1552   :  { %v2124_v30 = vmul.f32 %v2122_v29, %v2122_v29 }
0x1553   :  { %v2129_v51 = vsel %vm35_vm0, %v2125_v35, 0.0 }
0x1554   :  { %v2126_v31 = vsel %vm35_vm0, %v2124_v30, 0.0 }
0x1555   :  { %2127 = vadd.xlane.f32.xlu0 %v2126_v31 }
0x1559   :  { %2130 = vadd.xlane.f32.xlu0 %v2129_v51 }
0x15e2   :  { %v2128_v46 = vpop.xlane.xlu0 %2127 }
0x15e3   :  { %v2132_v47 = vmul.f32 0.03125, %v2128_v46 }
0x15e5   :  { %v2134_v48 = vadd.f32 1e-12, %v2132_v47 }
0x15e6   :  { %v2131_v42 = vpop.xlane.xlu0 %2130 }
0x15e7   :  { %3091 = vrsqrt.f32 %v2134_v48  ;;  %v2133_v49 = vmul.f32 0.03125, %v2131_v42 }
0x15e9   :  { %v2135_v14 = vadd.f32 1e-12, %v2133_v49 }
0x15eb   :  { %3093 = vrsqrt.f32 %v2135_v14 }
0x15f1   :  { %v3092_v15 = vpop.eup %3091 }
0x15f2   :  { %v2138_v16 = vmul.f32 %v3092_v15, %v2122_v29 }
0x15f4   :  { %v2144_v52 = vmul.f32 %v2610_v17, %v2138_v16 }
0x15f5   :  { %v3094_v53 = vpop.eup %3093 }
0x15f6   :  { %v2139_v55 = vmul.f32 %v3094_v53, %v2123_v28  ;;  %v2150_v54 = vadd.f32 %v2611_v19, %v2144_v52  ;;  %v2615_v28 = vld [vmem:[%s3518_s2 + $0xd] ss:$0 sm:$0xff] }
0x15f8   :  { %v2145_v57 = vmul.f32 %v2610_v17, %v2139_v55  ;;  %2882 = vmatprep.mubr.msk.f32.mxu1 %vm35_vm0, %v2150_v54  ;;  %v3138_v17 = vmov 0.0|0.0  }
0x15f9   :  { %3002 = vmatprep.subr.bf16.mxu1 %v3138_v17 }
0x15fa   :  { %v2151_v58 = vadd.f32 %v2611_v19, %v2145_v57 }
0x15fc   :  { %2883 = vmatmul.mubr.msk.f32.vlgmr.msra.gmra.mrb[24].mxu1 %vm35_vm0, %v2151_v58 }
0x15fd   :  { %2908 = vmatprep.mubr.msk.f32.mxu1 %vm3131_vm1, %v3130_v37 }
0x16cf   :  { %v2884_v3 = vpop.f32.mrb[24].mxu1 }
0x16d0   :  { %v2234_v4 = vadd.f32 %v2884_v3, %v2612_v2  ;;  %v2228_v5 = vpop.f32.mrb[25].mxu1  ;;  %v2456_v3 = vld [vmem:[%s3519_s3 + $0x10] sm:$0xff] }
0x16d1   :  { %v2229_v6 = vadd.f32 %v2612_v2, %v2228_v5  ;;  %v3006_v2 = vpack.c.bf16 %v2455_v38, %v2454_v0 }
0x16d2   :  { %v2238_v7 = vmul.f32 %v2234_v4, %v2234_v4 }
0x16d3   :  { %v2237_v8 = vmul.f32 %v2229_v6, %v2229_v6 }
0x16d4   :  { %v2240_v9 = vmul.f32 %v2238_v7, %v2234_v4 }
0x16d5   :  { %v2239_v10 = vmul.f32 %v2237_v8, %v2229_v6  ;;  %v2621_v8 = vld [vmem:[%s3519_s3 + $0x24] ss:$0 sm:$0xff] }
0x16d6   :  { %v2242_v11 = vmul.f32 0.044715, %v2240_v9 }
0x16d7   :  { %v2241_v12 = vmul.f32 0.044715, %v2239_v10 }
0x16d8   :  { %v2244_v13 = vadd.f32 %v2242_v11, %v2234_v4 }
0x16d9   :  { %v2243_v18 = vadd.f32 %v2241_v12, %v2229_v6 }
0x16da   :  { %v2246_v36 = vmul.f32 0.7978846, %v2244_v13 }
0x16db   :  { %v2245_v34 = vmul.f32 0.7978846, %v2243_v18 }
0x16dc   :  { %3095 = vtanh.f32 %v2246_v36 }
0x16dd   :  { %3097 = vtanh.f32 %v2245_v34 }
0x16e6   :  { %v3096_v20 = vpop.eup %3095 }
0x16e7   :  { %v3098_v21 = vpop.eup %3097  ;;  %v2250_v22 = vadd.f32 1.0, %v3096_v20 }
0x16e8   :  { %v2249_v23 = vadd.f32 1.0, %v3098_v21 }
0x16e9   :  { %v2252_v24 = vmul.f32 0.5, %v2250_v22 }
0x16ea   :  { %v2251_v25 = vmul.f32 0.5, %v2249_v23 }
0x16eb   :  { %v2254_v27 = vmul.f32 %v2252_v24, %v2234_v4  ;;  %v2457_v4 = vld [vmem:[%s3519_s3 + $0x18] sm:$0xff] }
0x16ec   :  { %v2253_v26 = vmul.f32 %v2251_v25, %v2229_v6  ;;  %v3009_v5 = vpack.c.bf16 %v2457_v4, %v2456_v3 }
0x16ee   :  { %2901 = vmatprep.mubr.msk.f32.mxu0 %vm1106_vm4, %v2253_v26 }
0x16ef   :  { %2902 = vmatmul.mubr.msk.f32.vlgmr.msra.gmra.mrb[20].mxu0 %vm1106_vm4, %v2254_v27 }
0x17c2   :  { %v2903_v29 = vpop.f32.mrb[20].mxu0 }
0x17c3   :  { %v2337_v30 = vadd.f32 %v2903_v29, %v2615_v28  ;;  %v2331_v31 = vpop.f32.mrb[21].mxu0 }
0x17c4   :  { %v2332_v35 = vadd.f32 %v2615_v28, %v2331_v31 }
0x17c5   :  { %v2341_v51 = vadd.f32 %v2337_v30, %v2151_v58  ;;  %v2618_v58 = vld [vmem:[%s3518_s2 + $0xe] ss:$0 sm:$0xff] }
0x17c6   :  { %v2340_v50 = vadd.f32 %v2332_v35, %v2150_v54 }
0x17c7   :  { %v2345_v41 = vsel %vm35_vm0, %v2341_v51, 0.0 }
0x17c8   :  { %2346 = vadd.xlane.f32.xlu1 %v2345_v41  ;;  %v2342_v43 = vsel %vm35_vm0, %v2340_v50, 0.0 }
0x17c9   :  { %2343 = vadd.xlane.f32.xlu0 %v2342_v43 }
0x1855   :  { %v2347_v40 = vpop.xlane.xlu1 %2346 }
0x1856   :  { %v2349_v44 = vmul.f32 0.03125, %v2347_v40  ;;  %v2344_v45 = vpop.xlane.xlu0 %2343 }
0x1857   :  { %v2348_v46 = vmul.f32 0.03125, %v2344_v45 }
0x1858   :  { %v2351_v47 = vsub.f32 %v2341_v51, %v2349_v44 }
0x1859   :  { %v2350_v48 = vsub.f32 %v2340_v50, %v2348_v46 }
0x185a   :  { %v2353_v42 = vmul.f32 %v2351_v47, %v2351_v47 }
0x185b   :  { %v2352_v49 = vmul.f32 %v2350_v48, %v2350_v48 }
0x185c   :  { %v2357_v14 = vsel %vm35_vm0, %v2353_v42, 0.0 }
0x185d   :  { %2358 = vadd.xlane.f32.xlu1 %v2357_v14  ;;  %v2354_v15 = vsel %vm35_vm0, %v2352_v49, 0.0 }
0x185e   :  { %2355 = vadd.xlane.f32.xlu0 %v2354_v15 }
0x18ea   :  { %v2359_v16 = vpop.xlane.xlu1 %2358 }
0x18eb   :  { %v2361_v19 = vmul.f32 0.03125, %v2359_v16  ;;  %v2356_v52 = vpop.xlane.xlu0 %2355 }
0x18ec   :  { %v2360_v53 = vmul.f32 0.03125, %v2356_v52 }
0x18ed   :  { %v2363_v55 = vadd.f32 1e-12, %v2361_v19 }
0x18ee   :  { %v2362_v54 = vadd.f32 1e-12, %v2360_v53 }
0x18ef   :  { %3099 = vrsqrt.f32 %v2363_v55 }
0x18f0   :  { %3101 = vrsqrt.f32 %v2362_v54 }
0x18f9   :  { %v3100_v57 = vpop.eup %3099 }
0x18fa   :  { %v3102_v59 = vpop.eup %3101  ;;  %v2367_v60 = vmul.f32 %v3100_v57, %v2351_v47 }
0x18fb   :  { %v2366_v61 = vmul.f32 %v3102_v59, %v2350_v48 }
0x18fc   :  { %v2373_v56 = vmul.f32 %v2618_v58, %v2367_v60 }
0x18fd   :  { %v2372_v63 = vmul.f32 %v2618_v58, %v2366_v61 }
0x18fe   :  { %v2379_v32 = vadd.f32 %v2619_v62, %v2373_v56 }
0x18ff   :  { %v2378_v33 = vadd.f32 %v2619_v62, %v2372_v63 }
0x1901   :  { %v3003_v39 = vpack.c.bf16 %v2379_v32, %v2378_v33 }
0x1903   :  { %3004 = vmatpush3.bf16.msra.mxu1 %v3003_v39 }
0x1904   :  { %3005 = vmatprep.subr.bf16.mxu1 %v3138_v17 }
0x1906   :  { %2909 = vmatmul.mubr.msk.f32.vlgmr.msra.gmra.mrb[26].mxu1 %vm187_vm2, %v2380_v1 }
0x1907   :  { %3007 = vmatpush3.bf16.msra.mxu1 %v3006_v2  ;;  %2919 = vmatprep.mubr.msk.f32.mxu1 %vm3131_vm1, %v3130_v37 }
0x1908   :  { %3008 = vmatprep.subr.bf16.mxu1 %v3138_v17 }
0x190b   :  { %3010 = vmatpush3.bf16.msra.mxu1 %v3009_v5 }
0x19d9   :  { %v2450_v6 = vpop.f32.mrb[26].mxu1 }
0x19da   :  { %v2910_v7 = vpop.f32.mrb[27].mxu1  ;;  %2920 = vmatmul.mubr.msk.f32.vlgmr.msra.gmra.mrb[28].mxu1 %vm35_vm0, %v2450_v6  ;;  %v2536_v12 = vsel %vm35_vm0, %v2450_v6, 0.0 }
0x1aad   :  { %v2532_v9 = vpop.f32.mrb[28].mxu1 }
0x1aae   :  { %v2533_v10 = vadd.f32 %v2621_v8, %v2532_v9  ;;  %v2921_v11 = vpop.f32.mrb[29].mxu1 }
0x1ab0   :  { %v2539_v13 = vcombine.low %v2536_v12, %v2533_v10 }
0x1ab2   :  { %2623 = vst.sshfl [vmem:[%s3520_s4] sm:$0x33 pattern:$0x76325410] %v2539_v13 }
0x1ab3   :  { %2553 = vsyncpa [#allocation3], 1 }

</bundles_post_ra>
